<compile_context>
chip_gen: v6e
topology: v6e:2x2x1
jax: 0.10.0
libtpu: 0.0.40
codegen_flags: <defaults>
</compile_context>

<pallas_src>
import functools

import jax
import jax.numpy as jnp
from jax.experimental import pallas as pl
from jax.experimental.pallas import tpu as pltpu

_EPS = 1e-5            # nn.BatchNorm2d default
_LANE = 128            # TPU lane width


def _round_up(x, m):
    return (x + m - 1) // m * m


# --------------------------- generation-aware sizing ------------------------ #

_PHYS_VMEM = None


def _physical_vmem_bytes():
    """Physical VMEM per core (128 MiB v5e/v6e, 64 MiB v7x) with safe fallback."""
    global _PHYS_VMEM
    if _PHYS_VMEM is None:
        try:
            info = pltpu.get_tpu_info()
            _PHYS_VMEM = int(getattr(info, "vmem_capacity_bytes", 0)) or (64 << 20)
        except Exception:
            _PHYS_VMEM = 64 << 20          # conservative (v7x per-TensorCore)
    return _PHYS_VMEM


def _vmem_limit_bytes():
    # ~96 MiB on v5e/v6e (128 MiB physical), ~48 MiB on v7x (64 MiB physical).
    return max(32 << 20, min(_physical_vmem_bytes() * 3 // 4, 110 << 20))


def _tile_budget_bytes():
    return int(_vmem_limit_bytes() * 0.8)     # headroom for compiler scratch


def _choose_tm(m, kp_max, cp, in_esize, budget):
    """Matmul M-tile from the VMEM budget:
       2*tm*Kp*in + 2*Kp*Cp*in (double-buffered operands) + 2*tm*Cp*4 (f32 out).
       Multiple of 128 (unmasked stores, full MXU rows); prefers an even tile
       count so the "parallel" grid axis splits evenly across v7x's 2 cores."""
    mp128 = _round_up(max(m, 1), _LANE)
    fixed = 2 * kp_max * cp * in_esize + 8 * kp_max * 4 + 8 * cp * 4
    per_row = 2 * kp_max * in_esize + 2 * cp * 4
    tm_max = (budget - fixed) // per_row
    tm_max = max(_LANE, min(1024, int(tm_max)))
    tm_max = max(_LANE, min((tm_max // _LANE) * _LANE, mp128))
    for tm in range(tm_max, _LANE - 1, -_LANE):
        t = -(-mp128 // tm)
        if t == 1 or t % 2 == 0:
            return tm
    return tm_max


def _choose_te(mp, tm, cp, budget):
    """Epilogue tile: pure HBM-bound elementwise pass -> as large as fits."""
    per_row = 3 * 2 * cp * 4                   # 2 inputs + 1 output, 2 buffers, f32
    cap = max(tm, min(4096, budget // per_row))
    te = tm
    while te * 2 <= cap and mp % (te * 2) == 0:
        te *= 2
    return te


def _compiler_params():
    return pltpu.CompilerParams(
        dimension_semantics=("parallel",),     # megacore-friendly M-tile axis
        vmem_limit_bytes=_vmem_limit_bytes())


# ----------------------------- Pallas kernels ------------------------------ #

def _matmul_stats_kernel(m_true, fuse_prologue, *refs):
    """conv-as-matmul tile (MXU, f32 accumulation) + lane-dense channel stats.

    Optional prologue: relu(x * kscale + kshift) applied to the im2col tile
    (folds the previous conv's BatchNorm + ReLU into this matmul).  Rows past
    the true M are masked out of the statistics (they only exist as padding).
    """
    if fuse_prologue:
        xp_ref, w_ref, ks_ref, kb_ref, y_ref, stats_ref = refs
    else:
        xp_ref, w_ref, y_ref, stats_ref = refs

    x = xp_ref[...]
    if fuse_prologue:
        xf = jnp.maximum(x.astype(jnp.float32) * ks_ref[...] + kb_ref[...], 0.0)
        x = xf.astype(xp_ref.dtype)

    acc = jnp.dot(x, w_ref[...], preferred_element_type=jnp.float32)
    y_ref[...] = acc.astype(y_ref.dtype)

    if m_true is not None:                      # exclude M-pad rows from stats
        tm = acc.shape[0]
        row = pl.program_id(0) * tm + jax.lax.broadcasted_iota(
            jnp.int32, acc.shape, 0)
        acc = jnp.where(row < m_true, acc, 0.0)

    s = jnp.sum(acc, axis=0, keepdims=True)             # (1, Cp)
    ss = jnp.sum(acc * acc, axis=0, keepdims=True)      # (1, Cp)
    cp = s.shape[-1]
    stats_ref[...] = jnp.concatenate([s, ss], axis=-1).reshape(1, 1, 2 * cp)


def _bn_add_relu_kernel(y_ref, scale_ref, shift_ref,
                        res_ref, rscale_ref, rshift_ref, o_ref):
    """BN(conv2) + BN(identity/downsample) residual add + ReLU, fused, f32."""
    y = y_ref[...] * scale_ref[...] + shift_ref[...]
    r = res_ref[...] * rscale_ref[...] + rshift_ref[...]
    o_ref[...] = jnp.maximum(y + r, 0.0).astype(o_ref.dtype)


# --------------------------- pallas_call wrappers --------------------------- #

def _conv_matmul_stats(xp, w_mat, *, tm, out_dtype, m_true=None, prologue=None):
    """Tiled matmul over M; returns conv output (Mp, Cp) and (T, 1, 2*Cp) stats."""
    Mp, Kp = xp.shape
    Cp = w_mat.shape[1]
    T = Mp // tm
    kern = functools.partial(_matmul_stats_kernel, m_true, prologue is not None)
    in_specs = [pl.BlockSpec((tm, Kp), lambda i: (i, 0)),
                pl.BlockSpec((Kp, Cp), lambda i: (0, 0))]
    args = [xp, w_mat]
    if prologue is not None:
        ks, kb = prologue
        in_specs += [pl.BlockSpec((1, Kp), lambda i: (0, 0)),
                     pl.BlockSpec((1, Kp), lambda i: (0, 0))]
        args += [ks, kb]
    return pl.pallas_call(
        kern,
        out_shape=(jax.ShapeDtypeStruct((Mp, Cp), out_dtype),
                   jax.ShapeDtypeStruct((T, 1, 2 * Cp), jnp.float32)),
        grid=(T,),
        in_specs=in_specs,
        out_specs=(pl.BlockSpec((tm, Cp), lambda i: (i, 0)),
                   pl.BlockSpec((1, 1, 2 * Cp), lambda i: (i, 0, 0))),
        compiler_params=_compiler_params(),
    )(*args)


def _bn_add_relu(y, scale, shift, res, rscale, rshift, *, te):
    Mp, Cp = y.shape
    T = Mp // te
    return pl.pallas_call(
        _bn_add_relu_kernel,
        out_shape=jax.ShapeDtypeStruct((Mp, Cp), jnp.float32),
        grid=(T,),
        in_specs=[pl.BlockSpec((te, Cp), lambda i: (i, 0)),
                  pl.BlockSpec((1, Cp), lambda i: (0, 0)),
                  pl.BlockSpec((1, Cp), lambda i: (0, 0)),
                  pl.BlockSpec((te, Cp), lambda i: (i, 0)),
                  pl.BlockSpec((1, Cp), lambda i: (0, 0)),
                  pl.BlockSpec((1, Cp), lambda i: (0, 0))],
        out_specs=pl.BlockSpec((te, Cp), lambda i: (i, 0)),
        compiler_params=_compiler_params(),
    )(y, scale, shift, res, rscale, rshift)


# ------------------------------- JAX glue ---------------------------------- #

def _im2col_cast(x_nhwc, ksize, stride, pad, *, kp, mp, dtype,
                 spatial_pad_value=None):
    """Build the (mp, kp) im2col operand directly in the MXU dtype: cast first,
    spatial-pad (zeros or a per-channel value), gather the taps, fuse the K-pad
    as an extra zero block in the concat, then row-pad to mp.  No second
    full-size pad/cast pass over the patch matrix."""
    x = x_nhwc.astype(dtype)
    N, H, W, C = x.shape
    if pad > 0:
        if spatial_pad_value is None:
            xpad = jnp.pad(x, ((0, 0), (pad, pad), (pad, pad), (0, 0)))
        else:
            pv = spatial_pad_value.astype(dtype).reshape(1, 1, 1, C)
            xpad = jnp.broadcast_to(pv, (N, H + 2 * pad, W + 2 * pad, C))
            xpad = xpad.at[:, pad:pad + H, pad:pad + W, :].set(x)
    else:
        xpad = x
    Ho = (H + 2 * pad - ksize) // stride + 1
    Wo = (W + 2 * pad - ksize) // stride + 1
    cols = [xpad[:, di:di + stride * Ho:stride, dj:dj + stride * Wo:stride, :]
            for di in range(ksize) for dj in range(ksize)]
    k = ksize * ksize * C
    if kp > k:
        cols.append(jnp.zeros((N, Ho, Wo, kp - k), dtype))   # fused K-pad
    patches = jnp.concatenate(cols, axis=-1).reshape(N * Ho * Wo, kp)
    m = N * Ho * Wo
    if mp > m:
        patches = jnp.pad(patches, ((0, mp - m), (0, 0)))
    return patches, (N, Ho, Wo)


def _w_mat_padded(w_oihw, kp, cp, dtype):
    """(Cout, Cin, kh, kw) -> zero-padded (kp, cp) matmul operand."""
    co, ci, kh, kw = w_oihw.shape
    w = jnp.transpose(w_oihw, (2, 3, 1, 0)).reshape(kh * kw * ci, co)
    return jnp.pad(w, ((0, kp - kh * kw * ci), (0, cp - co))).astype(dtype)


def _bn_scale_shift(stats, gamma, beta, m_true, cp):
    """Global (over all M rows) BN affine from lane-dense per-tile sums."""
    s = jnp.sum(stats[:, 0, :cp], axis=0)
    ss = jnp.sum(stats[:, 0, cp:], axis=0)
    mean = s / m_true
    # TODO(synk): Welford-style per-tile (mean, M2) merging would be more robust
    # than E[x^2]-E[x]^2 for activations with large means.
    var = jnp.maximum(ss / m_true - mean * mean, 0.0)     # biased, train-mode
    g = jnp.pad(gamma.astype(jnp.float32), (0, cp - gamma.shape[0]))
    b = jnp.pad(beta.astype(jnp.float32), (0, cp - beta.shape[0]))
    scale = g * jax.lax.rsqrt(var + _EPS)
    shift = b - mean * scale
    return scale.reshape(1, cp), shift.reshape(1, cp)


def resnet_block_forward(x_nhwc, p, stride, compute_dtype):
    N, H, W, Cin = x_nhwc.shape
    Cout = p["w1"].shape[0]
    Cp = _round_up(Cout, _LANE)

    Ho = (H - 1) // stride + 1
    Wo = (W - 1) // stride + 1
    M = N * Ho * Wo

    K1, K2 = 9 * Cin, 9 * Cout
    Kp1, Kp2 = _round_up(K1, _LANE), _round_up(K2, _LANE)
    Kpd = _round_up(Cin, _LANE)
    kp_max = max(Kp1, Kp2, Kpd if "wd" in p else 0)

    in_esize = jnp.dtype(compute_dtype).itemsize
    budget = _tile_budget_bytes()
    tm = _choose_tm(M, kp_max, Cp, in_esize, budget)
    Mp = _round_up(M, tm)
    te = _choose_te(Mp, tm, Cp, budget)
    m_mask = M if Mp > M else None

    # ---- conv1 (3x3, stride): compute-dtype operands AND activation store ---
    xp1, _ = _im2col_cast(x_nhwc, 3, stride, 1, kp=Kp1, mp=Mp, dtype=compute_dtype)
    w1 = _w_mat_padded(p["w1"], Kp1, Cp, compute_dtype)
    y1_raw, st1 = _conv_matmul_stats(xp1, w1, tm=tm, out_dtype=compute_dtype,
                                     m_true=m_mask)
    sc1, sh1 = _bn_scale_shift(st1, p["g1"], p["b1"], M, Cp)

    # ---- identity / downsample path (residual stays f32) --------------------
    if "wd" in p:
        xpd, _ = _im2col_cast(x_nhwc, 1, stride, 0, kp=Kpd, mp=Mp,
                              dtype=compute_dtype)
        wd = _w_mat_padded(p["wd"], Kpd, Cp, compute_dtype)
        res_raw, std_ = _conv_matmul_stats(xpd, wd, tm=tm, out_dtype=jnp.float32,
                                           m_true=m_mask)
        rsc, rsh = _bn_scale_shift(std_, p["gd"], p["bd"], M, Cp)
    else:
        ident = x_nhwc.reshape(N * H * W, Cin).astype(jnp.float32)
        res_raw = jnp.pad(ident, ((0, Mp - M), (0, Cp - Cin)))
        rsc = jnp.ones((1, Cp), jnp.float32)
        rsh = jnp.zeros((1, Cp), jnp.float32)

    # ---- conv2 (3x3, s=1) with BN1 + ReLU folded into its matmul prologue ---
    sc1c, sh1c = sc1[0, :Cout], sh1[0, :Cout]
    # Spatial-pad value p with relu(p*scale+shift) == 0 even after p is
    # quantized to bf16 (the margin absorbs the rounding error).
    # TODO(synk): scale==0 (gamma==0) has no such p; would need a fallback pass.
    margin = jnp.abs(sh1c) * (1.0 / 64.0) + 1e-3
    denom = jnp.where(jnp.abs(sc1c) < 1e-12, 1.0, sc1c)
    pad_val = -(sh1c + margin) / denom
    y1_nhwc = y1_raw[:M, :Cout].reshape(N, Ho, Wo, Cout)        # raw conv1 out
    xp2, _ = _im2col_cast(y1_nhwc, 3, 1, 1, kp=Kp2, mp=Mp, dtype=compute_dtype,
                          spatial_pad_value=pad_val)
    ksc = jnp.pad(jnp.tile(sc1c, 9), (0, Kp2 - K2)).reshape(1, Kp2)
    ksh = jnp.pad(jnp.tile(sh1c, 9), (0, Kp2 - K2)).reshape(1, Kp2)
    w2 = _w_mat_padded(p["w2"], Kp2, Cp, compute_dtype)
    y2_raw, st2 = _conv_matmul_stats(xp2, w2, tm=tm, out_dtype=jnp.float32,
                                     m_true=m_mask, prologue=(ksc, ksh))
    sc2, sh2 = _bn_scale_shift(st2, p["g2"], p["b2"], M, Cp)

    # ---- BN2 + BN(down) residual add + ReLU: single fused lane-dense pass ---
    out = _bn_add_relu(y2_raw, sc2, sh2, res_raw, rsc, rsh, te=te)
    return out[:M, :Cout].reshape(N, Ho, Wo, Cout)


def encoder_block_forward(x_nchw, params_list, compute_dtype=jnp.bfloat16):
    """EncoderBlock.forward: returns (out, skip) with skip == x (NCHW)."""
    skip = x_nchw
    x = jnp.transpose(x_nchw, (0, 2, 3, 1)).astype(jnp.float32)   # NHWC
    for i, p in enumerate(params_list):
        x = resnet_block_forward(x, p, stride=2 if i == 0 else 1,
                                 compute_dtype=compute_dtype)
    out = jnp.transpose(x, (0, 3, 1, 2))                          # back to NCHW
    return out, skip


# ------------------------ deterministic parameter init --------------------- #

def _init_block_params(key, cin, cout, stride):
    ks = jax.random.split(key, 9)
    p = {
        "w1": jax.random.normal(ks[0], (cout, cin, 3, 3), jnp.float32) * 0.1,
        "g1": jax.random.uniform(ks[1], (cout,), jnp.float32, 0.5, 1.5),
        "b1": jax.random.normal(ks[2], (cout,), jnp.float32) * 0.1,
        "w2": jax.random.normal(ks[3], (cout, cout, 3, 3), jnp.float32) * 0.1,
        "g2": jax.random.uniform(ks[4], (cout,), jnp.float32, 0.5, 1.5),
        "b2": jax.random.normal(ks[5], (cout,), jnp.float32) * 0.1,
    }
    if stride != 1 or cin != cout:
        p["wd"] = jax.random.normal(ks[6], (cout, cin, 1, 1), jnp.float32) * 0.1
        p["gd"] = jax.random.uniform(ks[7], (cout,), jnp.float32, 0.5, 1.5)
        p["bd"] = jax.random.normal(ks[8], (cout,), jnp.float32) * 0.1
    return p


def init_encoder_params(key, in_channels, out_channels, n_blocks):
    keys = jax.random.split(key, n_blocks)
    params = [_init_block_params(keys[0], in_channels, out_channels, stride=2)]
    for i in range(1, n_blocks):
        params.append(_init_block_params(keys[i], out_channels, out_channels,
                                         stride=1))
    return params


# ----------------------------- pure-JAX reference --------------------------- #

def _ref_conv(x_nhwc, w_oihw, stride, pad, dtype):
    return jax.lax.conv_general_dilated(
        x_nhwc.astype(dtype), jnp.transpose(w_oihw, (2, 3, 1, 0)).astype(dtype),
        window_strides=(stride, stride), padding=[(pad, pad), (pad, pad)],
        dimension_numbers=("NHWC", "HWIO", "NHWC"),
        preferred_element_type=jnp.float32)


def _ref_bn(x, gamma, beta):
    mean = jnp.mean(x, axis=(0, 1, 2), keepdims=True)
    var = jnp.mean((x - mean) ** 2, axis=(0, 1, 2), keepdims=True)
    return (x - mean) * jax.lax.rsqrt(var + _EPS) * gamma + beta


def _ref_resblock(x, p, stride, dtype):
    y = jax.nn.relu(_ref_bn(_ref_conv(x, p["w1"], stride, 1, dtype), p["g1"], p["b1"]))
    y = _ref_bn(_ref_conv(y, p["w2"], 1, 1, dtype), p["g2"], p["b2"])
    ident = x
    if "wd" in p:
        ident = _ref_bn(_ref_conv(x, p["wd"], stride, 0, dtype), p["gd"], p["bd"])
    return jax.nn.relu(y + ident)


def _ref_encoder(x_nchw, params_list, dtype):
    skip = x_nchw
    x = jnp.transpose(x_nchw, (0, 2, 3, 1)).astype(jnp.float32)
    for i, p in enumerate(params_list):
        x = _ref_resblock(x, p, stride=2 if i == 0 else 1, dtype=dtype)
    return jnp.transpose(x, (0, 3, 1, 2)), skip


# ---------------------------------- main ------------------------------------ #

if __name__ == "__main__":
    key = jax.random.PRNGKey(0)
    kx, kp = jax.random.split(key)

    N, Cin, H, W = 2, 4, 16, 16
    Cout, n_blocks = 8, 2
    x = jax.random.normal(kx, (N, Cin, H, W), jnp.float32)       # NCHW (PyTorch)
    params = init_encoder_params(kp, Cin, Cout, n_blocks)

    # ---- fast path: bf16 MXU operands/activations, f32 acc / BN / residual --
    fwd_bf16 = jax.jit(functools.partial(encoder_block_forward,
                                         compute_dtype=jnp.bfloat16))
    out, skip = fwd_bf16(x, params)
    out = jax.block_until_ready(out)
    skip = jax.block_until_ready(skip)

    assert out.shape == (N, Cout, H // 2, W // 2), out.shape
    assert skip.shape == x.shape and jnp.array_equal(skip, x)

    # bf16 smoke check (loose: the fused pipeline quantizes the stored conv1
    # activation before BN, the reference quantizes after -> re-quantization
    # divergence; the rigorous comparison is the f32 check below).
    ref_bf16, _ = _ref_encoder(x, params, jnp.bfloat16)
    assert jnp.allclose(out, ref_bf16, rtol=7.5e-2, atol=7.5e-2), float(
        jnp.max(jnp.abs(out - ref_bf16)))

    # ---- strict check: f32 operands vs pure-f32 reference (tight tol) ------
    fwd_f32 = jax.jit(functools.partial(encoder_block_forward,
                                        compute_dtype=jnp.float32))
    out32, _ = fwd_f32(x, params)
    out32 = jax.block_until_ready(out32)
    ref_f32, _ = _ref_encoder(x, params, jnp.float32)
    assert jnp.allclose(out32, ref_f32, rtol=2e-4, atol=2e-4), float(
        jnp.max(jnp.abs(out32 - ref_f32)))

    print("KERNEL_OK")
</pallas_src>

<mosaic_0001>
module attributes {stable_mosaic.version = 11 : i64} {
  func.func @_matmul_stats_kernel(%arg0: i32, %arg1: memref<128x128xbf16, #tpu.memory_space<vmem>>, %arg2: memref<128x128xbf16, #tpu.memory_space<vmem>>, %arg3: memref<128x128xbf16, #tpu.memory_space<vmem>>, %arg4: memref<1x1x256xf32, #tpu.memory_space<vmem>>) attributes {dimension_semantics = [#tpu.dimension_semantics<parallel>], iteration_bounds = array<i64: 1>, scalar_prefetch = 0 : i64, scratch_operands = 0 : i64, tpu.core_type = #tpu.core_type<tc>, window_params = [{transform_indices = @transform_0, window_bounds = array<i64: 128, 128>}, {pipeline_mode = #tpu.pipeline_mode<synchronous>, transform_indices = @transform_1, window_bounds = array<i64: 128, 128>}, {transform_indices = @transform_2, window_bounds = array<i64: 128, 128>}, {transform_indices = @transform_3, window_bounds = array<i64: 1, 1, 256>}]} {
    %c0 = arith.constant 0 : index
    %c0_0 = arith.constant 0 : index
    %0 = vector.load %arg1[%c0, %c0_0] : memref<128x128xbf16, #tpu.memory_space<vmem>>, vector<128x128xbf16>
    %c0_1 = arith.constant 0 : index
    %c0_2 = arith.constant 0 : index
    %1 = vector.load %arg2[%c0_1, %c0_2] : memref<128x128xbf16, #tpu.memory_space<vmem>>, vector<128x128xbf16>
    %cst = arith.constant dense<0.000000e+00> : vector<128x128xf32>
    %2 = tpu.matmul %0, %1, %cst {dimension_numbers = #tpu.dot_dimension_numbers<[1], [0], [0], [1], [0, 0, 1, 1], [], []>} : vector<128x128xbf16>, vector<128x128xbf16>, vector<128x128xf32> -> vector<128x128xf32>
    %3 = arith.truncf %2 : vector<128x128xf32> to vector<128x128xbf16>
    %c0_3 = arith.constant 0 : index
    %c0_4 = arith.constant 0 : index
    %4 = vector.load %arg3[%c0_3, %c0_4] : memref<128x128xbf16, #tpu.memory_space<vmem>>, vector<128x128xbf16>
    tpu.vector_store %arg3[%c0_3, %c0_4], %3 {strides = array<i32>} : memref<128x128xbf16, #tpu.memory_space<vmem>>, vector<128x128xbf16>,
    %cst_5 = arith.constant dense<0.000000e+00> : vector<128xf32>
    %5 = vector.multi_reduction <add>, %2, %cst_5 [0] : vector<128x128xf32> to vector<128xf32>
    %6 = vector.shape_cast %5 : vector<128xf32> to vector<1x128xf32>
    %7 = arith.mulf %2, %2 : vector<128x128xf32>
    %cst_6 = arith.constant dense<0.000000e+00> : vector<128xf32>
    %8 = vector.multi_reduction <add>, %7, %cst_6 [0] : vector<128x128xf32> to vector<128xf32>
    %9 = vector.shape_cast %8 : vector<128xf32> to vector<1x128xf32>
    %10 = tpu.concatenate %6, %9 in 1 : vector<1x128xf32>, vector<1x128xf32> -> vector<1x256xf32>
    %11 = vector.shape_cast %10 : vector<1x256xf32> to vector<1x1x256xf32>
    %c0_7 = arith.constant 0 : index
    %c0_8 = arith.constant 0 : index
    %c0_9 = arith.constant 0 : index
    %12 = vector.load %arg4[%c0_7, %c0_8, %c0_9] : memref<1x1x256xf32, #tpu.memory_space<vmem>>, vector<1x1x256xf32>
    tpu.vector_store %arg4[%c0_7, %c0_8, %c0_9], %11 {strides = array<i32>} : memref<1x1x256xf32, #tpu.memory_space<vmem>>, vector<1x1x256xf32>,
    return
  }
  func.func @transform_0(%arg0: i32) -> (i32, i32) {
    %c0_i32 = arith.constant 0 : i32
    %c0_i32_0 = arith.constant 0 : i32
    return %arg0, %c0_i32 : i32, i32
  }
  func.func @transform_1(%arg0: i32) -> (i32, i32) {
    %c0_i32 = arith.constant 0 : i32
    %c0_i32_0 = arith.constant 0 : i32
    %c0_i32_1 = arith.constant 0 : i32
    return %c0_i32, %c0_i32_0 : i32, i32
  }
  func.func @transform_2(%arg0: i32) -> (i32, i32) {
    %c0_i32 = arith.constant 0 : i32
    %c0_i32_0 = arith.constant 0 : i32
    return %arg0, %c0_i32 : i32, i32
  }
  func.func @transform_3(%arg0: i32) -> (i32, i32, i32) {
    %c0_i32 = arith.constant 0 : i32
    %c0_i32_0 = arith.constant 0 : i32
    %c0_i32_1 = arith.constant 0 : i32
    return %arg0, %c0_i32, %c0_i32_0 : i32, i32, i32
  }
}

module attributes {stable_mosaic.version = 11 : i64} {
  func.func @_matmul_stats_kernel(%arg0: i32, %arg1: memref<128x128xbf16, #tpu.memory_space<vmem>>, %arg2: memref<128x128xbf16, #tpu.memory_space<vmem>>, %arg3: memref<1x128xf32, #tpu.memory_space<vmem>>, %arg4: memref<1x128xf32, #tpu.memory_space<vmem>>, %arg5: memref<128x128xf32, #tpu.memory_space<vmem>>, %arg6: memref<1x1x256xf32, #tpu.memory_space<vmem>>) attributes {dimension_semantics = [#tpu.dimension_semantics<parallel>], iteration_bounds = array<i64: 1>, scalar_prefetch = 0 : i64, scratch_operands = 0 : i64, tpu.core_type = #tpu.core_type<tc>, window_params = [{transform_indices = @transform_0, window_bounds = array<i64: 128, 128>}, {pipeline_mode = #tpu.pipeline_mode<synchronous>, transform_indices = @transform_1, window_bounds = array<i64: 128, 128>}, {pipeline_mode = #tpu.pipeline_mode<synchronous>, transform_indices = @transform_2, window_bounds = array<i64: 1, 128>}, {pipeline_mode = #tpu.pipeline_mode<synchronous>, transform_indices = @transform_3, window_bounds = array<i64: 1, 128>}, {transform_indices = @transform_4, window_bounds = array<i64: 128, 128>}, {transform_indices = @transform_5, window_bounds = array<i64: 1, 1, 256>}]} {
    %c0 = arith.constant 0 : index
    %c0_0 = arith.constant 0 : index
    %0 = vector.load %arg1[%c0, %c0_0] : memref<128x128xbf16, #tpu.memory_space<vmem>>, vector<128x128xbf16>
    %1 = arith.extf %0 : vector<128x128xbf16> to vector<128x128xf32>
    %c0_1 = arith.constant 0 : index
    %c0_2 = arith.constant 0 : index
    %2 = vector.load %arg3[%c0_1, %c0_2] : memref<1x128xf32, #tpu.memory_space<vmem>>, vector<1x128xf32>
    %3 = vector.broadcast %2 : vector<1x128xf32> to vector<128x128xf32>
    %4 = arith.mulf %1, %3 : vector<128x128xf32>
    %c0_3 = arith.constant 0 : index
    %c0_4 = arith.constant 0 : index
    %5 = vector.load %arg4[%c0_3, %c0_4] : memref<1x128xf32, #tpu.memory_space<vmem>>, vector<1x128xf32>
    %6 = vector.broadcast %5 : vector<1x128xf32> to vector<128x128xf32>
    %7 = arith.addf %4, %6 : vector<128x128xf32>
    %cst = arith.constant 0.000000e+00 : f32
    %8 = vector.broadcast %cst : f32 to vector<128x128xf32>
    %9 = arith.maximumf %7, %8 : vector<128x128xf32>
    %10 = arith.truncf %9 : vector<128x128xf32> to vector<128x128xbf16>
    %c0_5 = arith.constant 0 : index
    %c0_6 = arith.constant 0 : index
    %11 = vector.load %arg2[%c0_5, %c0_6] : memref<128x128xbf16, #tpu.memory_space<vmem>>, vector<128x128xbf16>
    %cst_7 = arith.constant dense<0.000000e+00> : vector<128x128xf32>
    %12 = tpu.matmul %10, %11, %cst_7 {dimension_numbers = #tpu.dot_dimension_numbers<[1], [0], [0], [1], [0, 0, 1, 1], [], []>} : vector<128x128xbf16>, vector<128x128xbf16>, vector<128x128xf32> -> vector<128x128xf32>
    %c0_8 = arith.constant 0 : index
    %c0_9 = arith.constant 0 : index
    %13 = vector.load %arg5[%c0_8, %c0_9] : memref<128x128xf32, #tpu.memory_space<vmem>>, vector<128x128xf32>
    tpu.vector_store %arg5[%c0_8, %c0_9], %12 {strides = array<i32>} : memref<128x128xf32, #tpu.memory_space<vmem>>, vector<128x128xf32>,
    %cst_10 = arith.constant dense<0.000000e+00> : vector<128xf32>
    %14 = vector.multi_reduction <add>, %12, %cst_10 [0] : vector<128x128xf32> to vector<128xf32>
    %15 = vector.shape_cast %14 : vector<128xf32> to vector<1x128xf32>
    %16 = arith.mulf %12, %12 : vector<128x128xf32>
    %cst_11 = arith.constant dense<0.000000e+00> : vector<128xf32>
    %17 = vector.multi_reduction <add>, %16, %cst_11 [0] : vector<128x128xf32> to vector<128xf32>
    %18 = vector.shape_cast %17 : vector<128xf32> to vector<1x128xf32>
    %19 = tpu.concatenate %15, %18 in 1 : vector<1x128xf32>, vector<1x128xf32> -> vector<1x256xf32>
    %20 = vector.shape_cast %19 : vector<1x256xf32> to vector<1x1x256xf32>
    %c0_12 = arith.constant 0 : index
    %c0_13 = arith.constant 0 : index
    %c0_14 = arith.constant 0 : index
    %21 = vector.load %arg6[%c0_12, %c0_13, %c0_14] : memref<1x1x256xf32, #tpu.memory_space<vmem>>, vector<1x1x256xf32>
    tpu.vector_store %arg6[%c0_12, %c0_13, %c0_14], %20 {strides = array<i32>} : memref<1x1x256xf32, #tpu.memory_space<vmem>>, vector<1x1x256xf32>,
    return
  }
  func.func @transform_0(%arg0: i32) -> (i32, i32) {
    %c0_i32 = arith.constant 0 : i32
    %c0_i32_0 = arith.constant 0 : i32
    return %arg0, %c0_i32 : i32, i32
  }
  func.func @transform_1(%arg0: i32) -> (i32, i32) {
    %c0_i32 = arith.constant 0 : i32
    %c0_i32_0 = arith.constant 0 : i32
    %c0_i32_1 = arith.constant 0 : i32
    return %c0_i32, %c0_i32_0 : i32, i32
  }
  func.func @transform_2(%arg0: i32) -> (i32, i32) {
    %c0_i32 = arith.constant 0 : i32
    %c0_i32_0 = arith.constant 0 : i32
    %c0_i32_1 = arith.constant 0 : i32
    return %c0_i32, %c0_i32_0 : i32, i32
  }
  func.func @transform_3(%arg0: i32) -> (i32, i32) {
    %c0_i32 = arith.constant 0 : i32
    %c0_i32_0 = arith.constant 0 : i32
    %c0_i32_1 = arith.constant 0 : i32
    return %c0_i32, %c0_i32_0 : i32, i32
  }
  func.func @transform_4(%arg0: i32) -> (i32, i32) {
    %c0_i32 = arith.constant 0 : i32
    %c0_i32_0 = arith.constant 0 : i32
    return %arg0, %c0_i32 : i32, i32
  }
  func.func @transform_5(%arg0: i32) -> (i32, i32, i32) {
    %c0_i32 = arith.constant 0 : i32
    %c0_i32_0 = arith.constant 0 : i32
    %c0_i32_1 = arith.constant 0 : i32
    return %arg0, %c0_i32, %c0_i32_0 : i32, i32, i32
  }
}

module attributes {stable_mosaic.version = 11 : i64} {
  func.func @_bn_add_relu_kernel(%arg0: i32, %arg1: memref<128x128xf32, #tpu.memory_space<vmem>>, %arg2: memref<1x128xf32, #tpu.memory_space<vmem>>, %arg3: memref<1x128xf32, #tpu.memory_space<vmem>>, %arg4: memref<128x128xf32, #tpu.memory_space<vmem>>, %arg5: memref<1x128xf32, #tpu.memory_space<vmem>>, %arg6: memref<1x128xf32, #tpu.memory_space<vmem>>, %arg7: memref<128x128xf32, #tpu.memory_space<vmem>>) attributes {dimension_semantics = [#tpu.dimension_semantics<parallel>], iteration_bounds = array<i64: 1>, scalar_prefetch = 0 : i64, scratch_operands = 0 : i64, tpu.core_type = #tpu.core_type<tc>, window_params = [{transform_indices = @transform_0, window_bounds = array<i64: 128, 128>}, {pipeline_mode = #tpu.pipeline_mode<synchronous>, transform_indices = @transform_1, window_bounds = array<i64: 1, 128>}, {pipeline_mode = #tpu.pipeline_mode<synchronous>, transform_indices = @transform_2, window_bounds = array<i64: 1, 128>}, {transform_indices = @transform_3, window_bounds = array<i64: 128, 128>}, {pipeline_mode = #tpu.pipeline_mode<synchronous>, transform_indices = @transform_4, window_bounds = array<i64: 1, 128>}, {pipeline_mode = #tpu.pipeline_mode<synchronous>, transform_indices = @transform_5, window_bounds = array<i64: 1, 128>}, {transform_indices = @transform_6, window_bounds = array<i64: 128, 128>}]} {
    %c0 = arith.constant 0 : index
    %c0_0 = arith.constant 0 : index
    %0 = vector.load %arg1[%c0, %c0_0] : memref<128x128xf32, #tpu.memory_space<vmem>>, vector<128x128xf32>
    %c0_1 = arith.constant 0 : index
    %c0_2 = arith.constant 0 : index
    %1 = vector.load %arg2[%c0_1, %c0_2] : memref<1x128xf32, #tpu.memory_space<vmem>>, vector<1x128xf32>
    %2 = vector.broadcast %1 : vector<1x128xf32> to vector<128x128xf32>
    %3 = arith.mulf %0, %2 : vector<128x128xf32>
    %c0_3 = arith.constant 0 : index
    %c0_4 = arith.constant 0 : index
    %4 = vector.load %arg3[%c0_3, %c0_4] : memref<1x128xf32, #tpu.memory_space<vmem>>, vector<1x128xf32>
    %5 = vector.broadcast %4 : vector<1x128xf32> to vector<128x128xf32>
    %6 = arith.addf %3, %5 : vector<128x128xf32>
    %c0_5 = arith.constant 0 : index
    %c0_6 = arith.constant 0 : index
    %7 = vector.load %arg4[%c0_5, %c0_6] : memref<128x128xf32, #tpu.memory_space<vmem>>, vector<128x128xf32>
    %c0_7 = arith.constant 0 : index
    %c0_8 = arith.constant 0 : index
    %8 = vector.load %arg5[%c0_7, %c0_8] : memref<1x128xf32, #tpu.memory_space<vmem>>, vector<1x128xf32>
    %9 = vector.broadcast %8 : vector<1x128xf32> to vector<128x128xf32>
    %10 = arith.mulf %7, %9 : vector<128x128xf32>
    %c0_9 = arith.constant 0 : index
    %c0_10 = arith.constant 0 : index
    %11 = vector.load %arg6[%c0_9, %c0_10] : memref<1x128xf32, #tpu.memory_space<vmem>>, vector<1x128xf32>
    %12 = vector.broadcast %11 : vector<1x128xf32> to vector<128x128xf32>
    %13 = arith.addf %10, %12 : vector<128x128xf32>
    %14 = arith.addf %6, %13 : vector<128x128xf32>
    %cst = arith.constant 0.000000e+00 : f32
    %15 = vector.broadcast %cst : f32 to vector<128x128xf32>
    %16 = arith.maximumf %14, %15 : vector<128x128xf32>
    %c0_11 = arith.constant 0 : index
    %c0_12 = arith.constant 0 : index
    %17 = vector.load %arg7[%c0_11, %c0_12] : memref<128x128xf32, #tpu.memory_space<vmem>>, vector<128x128xf32>
    tpu.vector_store %arg7[%c0_11, %c0_12], %16 {strides = array<i32>} : memref<128x128xf32, #tpu.memory_space<vmem>>, vector<128x128xf32>,
    return
  }
  func.func @transform_0(%arg0: i32) -> (i32, i32) {
    %c0_i32 = arith.constant 0 : i32
    %c0_i32_0 = arith.constant 0 : i32
    return %arg0, %c0_i32 : i32, i32
  }
  func.func @transform_1(%arg0: i32) -> (i32, i32) {
    %c0_i32 = arith.constant 0 : i32
    %c0_i32_0 = arith.constant 0 : i32
    %c0_i32_1 = arith.constant 0 : i32
    return %c0_i32, %c0_i32_0 : i32, i32
  }
  func.func @transform_2(%arg0: i32) -> (i32, i32) {
    %c0_i32 = arith.constant 0 : i32
    %c0_i32_0 = arith.constant 0 : i32
    %c0_i32_1 = arith.constant 0 : i32
    return %c0_i32, %c0_i32_0 : i32, i32
  }
  func.func @transform_3(%arg0: i32) -> (i32, i32) {
    %c0_i32 = arith.constant 0 : i32
    %c0_i32_0 = arith.constant 0 : i32
    return %arg0, %c0_i32 : i32, i32
  }
  func.func @transform_4(%arg0: i32) -> (i32, i32) {
    %c0_i32 = arith.constant 0 : i32
    %c0_i32_0 = arith.constant 0 : i32
    %c0_i32_1 = arith.constant 0 : i32
    return %c0_i32, %c0_i32_0 : i32, i32
  }
  func.func @transform_5(%arg0: i32) -> (i32, i32) {
    %c0_i32 = arith.constant 0 : i32
    %c0_i32_0 = arith.constant 0 : i32
    %c0_i32_1 = arith.constant 0 : i32
    return %c0_i32, %c0_i32_0 : i32, i32
  }
  func.func @transform_6(%arg0: i32) -> (i32, i32) {
    %c0_i32 = arith.constant 0 : i32
    %c0_i32_0 = arith.constant 0 : i32
    return %arg0, %c0_i32 : i32, i32
  }
}

module attributes {stable_mosaic.version = 11 : i64} {
  func.func @_matmul_stats_kernel(%arg0: i32, %arg1: memref<128x128xbf16, #tpu.memory_space<vmem>>, %arg2: memref<128x128xbf16, #tpu.memory_space<vmem>>, %arg3: memref<128x128xf32, #tpu.memory_space<vmem>>, %arg4: memref<1x1x256xf32, #tpu.memory_space<vmem>>) attributes {dimension_semantics = [#tpu.dimension_semantics<parallel>], iteration_bounds = array<i64: 1>, scalar_prefetch = 0 : i64, scratch_operands = 0 : i64, tpu.core_type = #tpu.core_type<tc>, window_params = [{transform_indices = @transform_0, window_bounds = array<i64: 128, 128>}, {pipeline_mode = #tpu.pipeline_mode<synchronous>, transform_indices = @transform_1, window_bounds = array<i64: 128, 128>}, {transform_indices = @transform_2, window_bounds = array<i64: 128, 128>}, {transform_indices = @transform_3, window_bounds = array<i64: 1, 1, 256>}]} {
    %c0 = arith.constant 0 : index
    %c0_0 = arith.constant 0 : index
    %0 = vector.load %arg1[%c0, %c0_0] : memref<128x128xbf16, #tpu.memory_space<vmem>>, vector<128x128xbf16>
    %c0_1 = arith.constant 0 : index
    %c0_2 = arith.constant 0 : index
    %1 = vector.load %arg2[%c0_1, %c0_2] : memref<128x128xbf16, #tpu.memory_space<vmem>>, vector<128x128xbf16>
    %cst = arith.constant dense<0.000000e+00> : vector<128x128xf32>
    %2 = tpu.matmul %0, %1, %cst {dimension_numbers = #tpu.dot_dimension_numbers<[1], [0], [0], [1], [0, 0, 1, 1], [], []>} : vector<128x128xbf16>, vector<128x128xbf16>, vector<128x128xf32> -> vector<128x128xf32>
    %c0_3 = arith.constant 0 : index
    %c0_4 = arith.constant 0 : index
    %3 = vector.load %arg3[%c0_3, %c0_4] : memref<128x128xf32, #tpu.memory_space<vmem>>, vector<128x128xf32>
    tpu.vector_store %arg3[%c0_3, %c0_4], %2 {strides = array<i32>} : memref<128x128xf32, #tpu.memory_space<vmem>>, vector<128x128xf32>,
    %cst_5 = arith.constant dense<0.000000e+00> : vector<128xf32>
    %4 = vector.multi_reduction <add>, %2, %cst_5 [0] : vector<128x128xf32> to vector<128xf32>
    %5 = vector.shape_cast %4 : vector<128xf32> to vector<1x128xf32>
    %6 = arith.mulf %2, %2 : vector<128x128xf32>
    %cst_6 = arith.constant dense<0.000000e+00> : vector<128xf32>
    %7 = vector.multi_reduction <add>, %6, %cst_6 [0] : vector<128x128xf32> to vector<128xf32>
    %8 = vector.shape_cast %7 : vector<128xf32> to vector<1x128xf32>
    %9 = tpu.concatenate %5, %8 in 1 : vector<1x128xf32>, vector<1x128xf32> -> vector<1x256xf32>
    %10 = vector.shape_cast %9 : vector<1x256xf32> to vector<1x1x256xf32>
    %c0_7 = arith.constant 0 : index
    %c0_8 = arith.constant 0 : index
    %c0_9 = arith.constant 0 : index
    %11 = vector.load %arg4[%c0_7, %c0_8, %c0_9] : memref<1x1x256xf32, #tpu.memory_space<vmem>>, vector<1x1x256xf32>
    tpu.vector_store %arg4[%c0_7, %c0_8, %c0_9], %10 {strides = array<i32>} : memref<1x1x256xf32, #tpu.memory_space<vmem>>, vector<1x1x256xf32>,
    return
  }
  func.func @transform_0(%arg0: i32) -> (i32, i32) {
    %c0_i32 = arith.constant 0 : i32
    %c0_i32_0 = arith.constant 0 : i32
    return %arg0, %c0_i32 : i32, i32
  }
  func.func @transform_1(%arg0: i32) -> (i32, i32) {
    %c0_i32 = arith.constant 0 : i32
    %c0_i32_0 = arith.constant 0 : i32
    %c0_i32_1 = arith.constant 0 : i32
    return %c0_i32, %c0_i32_0 : i32, i32
  }
  func.func @transform_2(%arg0: i32) -> (i32, i32) {
    %c0_i32 = arith.constant 0 : i32
    %c0_i32_0 = arith.constant 0 : i32
    return %arg0, %c0_i32 : i32, i32
  }
  func.func @transform_3(%arg0: i32) -> (i32, i32, i32) {
    %c0_i32 = arith.constant 0 : i32
    %c0_i32_0 = arith.constant 0 : i32
    %c0_i32_1 = arith.constant 0 : i32
    return %arg0, %c0_i32, %c0_i32_0 : i32, i32, i32
  }
}

</mosaic_0001>

<bundles_post_ra>
// kernel: tile.18
= control target key start
LH: loop header
LB: loop body
LE: loop exit
PB: predicated region body
PF: predicated region fallthrough
CT: control target
= control target key end

     0   :  { %s28_s0 = inlined_call_operand.vmem [shape: f32[8], index: 0, kind: input, shape index: {}]   ;;  %s29_s1 = inlined_call_operand.vmem [shape: f32[9,8], index: 1, kind: output, shape index: {}]  }
   0x1   :  { %v4_v0 = vld [vmem:[%s28_s0] ss:$0 sm:$0xff] }
   0x2   :  { %5 = vst [vmem:[%s29_s1] sm:$0xff] %v4_v0  ;;  %8 = vst [vmem:[%s29_s1 + $0x8] sm:$0xff] %v4_v0 }

// kernel: tile.19
= control target key start
LH: loop header
LB: loop body
LE: loop exit
PB: predicated region body
PF: predicated region fallthrough
CT: control target
= control target key end

     0   :  { %s77_s10 = smov 64   ;;  %s78_s11 = smov 48   ;;  %vm3_vm0 = vcmask 64512   ;;  %vm9_vm1 = vcmask 589312   ;;  %vm15_vm2 = vcmask 523712   ;;  %vm21_vm3 = vcmask 458112   ;;  %s125_s0 = inlined_call_operand.vmem [shape: f32[9,8], index: 0, kind: input, shape index: {}]   ;;  %s126_s1 = inlined_call_operand.vmem [shape: f32[72], index: 1, kind: output, shape index: {}]  }
   0x1   :  { %v61_v0 = vld [vmem:[%s125_s0 + $0x8] sm:$0x1]   ;;  %v63_v1 = vld [vmem:[%s125_s0 + $0x6] sm:$0x1]   ;;  %v62_v2 = vld [vmem:[%s125_s0 + $0x7] sm:$0x1]  }
   0x2   :  { %7 = vrot.lane.b32.xlu0 %v61_v0, %s77_s10  ;;  %19 = vrot.lane.b32.xlu1 %v63_v1, %s78_s11  ;;  %v64_v3 = vld [vmem:[%s125_s0 + $0x5] sm:$0x1]   ;;  %v2_v4 = vld [vmem:[%s125_s0] sm:$0x1]   ;;  %s79_s18 = smov 56   ;;  %s80_s19 = smov 40  }
   0x3   :  { %4 = vst.msk [vmem:[#allocation0] sm:$0x1] %vm3_vm0, %v2_v4   ;;  %v65_v5 = vld [vmem:[%s125_s0 + $0x4] sm:$0x1]   ;;  %v66_v6 = vld [vmem:[%s125_s0 + $0x3] sm:$0x1]  }
   0x4   :  { %s81_s24 = smov 32   ;;  %s82_s25 = smov 24   ;;  %v67_v7 = vld [vmem:[%s125_s0 + $0x2] sm:$0x1]   ;;  %v68_v8 = vld [vmem:[%s125_s0 + $0x1] sm:$0x1]  }
   0x5   :  { %s83_s0 = smov 16   ;;  %s84_s30 = smov 8   ;;  %vm27_vm4 = vcmask 392512   ;;  %vm33_vm5 = vcmask 326912   ;;  %vm39_vm6 = vcmask 261312   ;;  %vm45_vm7 = vcmask 195712  }
   0x6   :  { %13 = vrot.lane.b32.xlu0 %v62_v2, %s79_s18  ;;  %25 = vrot.lane.b32.xlu1 %v64_v3, %s80_s19  ;;  %vm51_vm8 = vcmask 130112  }
   0xa   :  { %31 = vrot.lane.b32.xlu0 %v65_v5, %s81_s24  ;;  %37 = vrot.lane.b32.xlu1 %v66_v6, %s82_s25 }
   0xe   :  { %43 = vrot.lane.b32.xlu0 %v67_v7, %s83_s0  ;;  %49 = vrot.lane.b32.xlu1 %v68_v8, %s84_s30 }
  0x74   :  { %v8_v9 = vpop.permute.xlu0 %7   ;;  %v20_v10 = vpop.permute.xlu1 %19  }
  0x75   :  { %10 = vst.msk [vmem:[#allocation0] sm:$0x1] %vm9_vm1, %v8_v9  }
  0x78   :  { %v14_v11 = vpop.permute.xlu0 %13   ;;  %v26_v12 = vpop.permute.xlu1 %25  }
  0x79   :  { %16 = vst.msk [vmem:[#allocation0] sm:$0x1] %vm15_vm2, %v14_v11  }
  0x7a   :  { %22 = vst.msk [vmem:[#allocation0] sm:$0x1] %vm21_vm3, %v20_v10  }
  0x7b   :  { %28 = vst.msk [vmem:[#allocation0] sm:$0x1] %vm27_vm4, %v26_v12  }
  0x7c   :  { %v32_v13 = vpop.permute.xlu0 %31   ;;  %v38_v14 = vpop.permute.xlu1 %37  }
  0x7d   :  { %34 = vst.msk [vmem:[#allocation0] sm:$0x1] %vm33_vm5, %v32_v13  }
  0x7e   :  { %40 = vst.msk [vmem:[#allocation0] sm:$0x1] %vm39_vm6, %v38_v14  }
  0x80   :  { %v44_v15 = vpop.permute.xlu0 %43   ;;  %v50_v16 = vpop.permute.xlu1 %49  }
  0x81   :  { %46 = vst.msk [vmem:[#allocation0] sm:$0x1] %vm45_vm7, %v44_v15  }
  0x82   :  { %52 = vst.msk [vmem:[#allocation0] sm:$0x1] %vm51_vm8, %v50_v16  }
  0x89   :  { %v57_v17 = vld [vmem:[#allocation0] sm:$0x1] }
  0x8a   :  { %60 = vst [vmem:[%s126_s1] sm:$0x1] %v57_v17 }

// kernel: encoder_block_forward.7
= control target key start
LH: loop header
LB: loop body
LE: loop exit
PB: predicated region body
PF: predicated region fallthrough
CT: control target
= control target key end

     0   :  { %s680_s1 = inlined_call_operand.vmem [shape: bf16[128,128], index: 1, kind: input, shape index: {}]   ;;  %s681_s0 = inlined_call_operand.vmem [shape: bf16[128,128], index: 0, kind: input, shape index: {}]   ;;  %s682_s2 = inlined_call_operand.vmem [shape: bf16[128,128], index: 2, kind: output, shape index: {0}]   ;;  %s683_s3 = inlined_call_operand.vmem [shape: f32[1,1,256], index: 3, kind: output, shape index: {1}]  }
   0x1   :  { %v568_v0 = vld [vmem:[%s680_s1 + $0x38] sm:$0xff]   ;;  %v569_v1 = vld [vmem:[%s680_s1 + $0x30] sm:$0xff]   ;;  %v570_v2 = vld [vmem:[%s680_s1 + $0x28] sm:$0xff]  }
   0x2   :  { %519 = vmatprep.subr.bf16.mxu0 %v568_v0  ;;  %551 = vmatprep.subr.bf16.mxu1 %v568_v0  ;;  %v571_v3 = vld [vmem:[%s680_s1 + $0x20] sm:$0xff]   ;;  %v572_v5 = vld [vmem:[%s680_s1 + $0x18] sm:$0xff]   ;;  %v573_v7 = vld [vmem:[%s680_s1 + $0x10] sm:$0xff]  }
   0x3   :  { %520 = vmatpush3.bf16.msra.mxu0 %v568_v0  ;;  %559 = vmatpush3.bf16.msra.mxu1 %v568_v0  ;;  %v576_v4 = vld [vmem:[%s681_s0] sm:$0xff]   ;;  %v574_v8 = vld [vmem:[%s680_s1 + $0x8] sm:$0xff]   ;;  %v578_v12 = vld [vmem:[%s681_s0 + $0x10] sm:$0xff]  }
   0x4   :  { %521 = vmatprep.subr.bf16.mxu0 %v569_v1  ;;  %552 = vmatprep.subr.bf16.mxu1 %v569_v1  ;;  %v580_v6 = vld [vmem:[%s681_s0 + $0x20] sm:$0xff]   ;;  %v577_v10 = vld [vmem:[%s681_s0 + $0x8] sm:$0xff]   ;;  %v582_v13 = vld [vmem:[%s681_s0 + $0x30] sm:$0xff]  }
   0x5   :  { %535 = vmatprep.mubr.bf16.mxu0 %v576_v4  ;;  %543 = vmatprep.mubr.bf16.mxu1 %v580_v6  ;;  %v575_v9 = vld [vmem:[%s680_s1] sm:$0xff]   ;;  %v581_v11 = vld [vmem:[%s681_s0 + $0x28] sm:$0xff]   ;;  %v579_v14 = vld [vmem:[%s681_s0 + $0x18] sm:$0xff]  }
   0x6   :  { %v583_v15 = vld [vmem:[%s681_s0 + $0x38] sm:$0xff]  }
   0x7   :  { %522 = vmatpush3.bf16.msra.mxu0 %v569_v1  ;;  %560 = vmatpush3.bf16.msra.mxu1 %v569_v1 }
   0x8   :  { %523 = vmatprep.subr.bf16.mxu0 %v570_v2  ;;  %553 = vmatprep.subr.bf16.mxu1 %v570_v2 }
   0xb   :  { %524 = vmatpush3.bf16.msra.mxu0 %v570_v2  ;;  %561 = vmatpush3.bf16.msra.mxu1 %v570_v2 }
   0xc   :  { %525 = vmatprep.subr.bf16.mxu0 %v571_v3  ;;  %554 = vmatprep.subr.bf16.mxu1 %v571_v3 }
   0xf   :  { %526 = vmatpush3.bf16.msra.mxu0 %v571_v3  ;;  %562 = vmatpush3.bf16.msra.mxu1 %v571_v3 }
  0x10   :  { %527 = vmatprep.subr.bf16.mxu0 %v572_v5  ;;  %555 = vmatprep.subr.bf16.mxu1 %v572_v5 }
  0x13   :  { %528 = vmatpush3.bf16.msra.mxu0 %v572_v5  ;;  %563 = vmatpush3.bf16.msra.mxu1 %v572_v5 }
  0x14   :  { %529 = vmatprep.subr.bf16.mxu0 %v573_v7  ;;  %556 = vmatprep.subr.bf16.mxu1 %v573_v7 }
  0x17   :  { %530 = vmatpush3.bf16.msra.mxu0 %v573_v7  ;;  %564 = vmatpush3.bf16.msra.mxu1 %v573_v7 }
  0x18   :  { %531 = vmatprep.subr.bf16.mxu0 %v574_v8  ;;  %557 = vmatprep.subr.bf16.mxu1 %v574_v8 }
  0x1b   :  { %532 = vmatpush3.bf16.msra.mxu0 %v574_v8  ;;  %565 = vmatpush3.bf16.msra.mxu1 %v574_v8 }
  0x1c   :  { %533 = vmatprep.subr.bf16.mxu0 %v575_v9  ;;  %558 = vmatprep.subr.bf16.mxu1 %v575_v9 }
  0x1f   :  { %534 = vmatpush3.bf16.msra.mxu0 %v575_v9  ;;  %566 = vmatpush3.bf16.msra.mxu1 %v575_v9 }
  0x22   :  { %536 = vmatmul.mubr.bf16.vlgmr.msra.gmra.mxu0 %v577_v10  ;;  %544 = vmatmul.mubr.bf16.vlgmr.msra.gmra.mxu1 %v581_v11 }
  0x23   :  { %539 = vmatprep.mubr.bf16.mxu0 %v578_v12  ;;  %547 = vmatprep.mubr.bf16.mxu1 %v582_v13 }
  0x2a   :  { %540 = vmatmul.mubr.bf16.gmra.mxu0 %v579_v14  ;;  %548 = vmatmul.mubr.bf16.gmra.mxu1 %v583_v15 }
  0xe2   :  { %v537_v16 = vpop.f32.mrf.mxu0  ;;  %v545_v17 = vpop.f32.mrf.mxu1 }
  0xe3   :  { %v342_v33 = vmul.f32 %v537_v16, %v537_v16  ;;  %v350_v3 = vmul.f32 %v545_v17, %v545_v17 }
  0xe4   :  { %v176_v18 = vpop.f32.mrf.mxu0  ;;  %v208_v19 = vpop.f32.mrf.mxu1 }
  0xe5   :  { %v340_v24 = vmul.f32 %v176_v18, %v176_v18  ;;  %v348_v61 = vmul.f32 %v208_v19, %v208_v19 }
  0xe6   :  { %v538_v20 = vpop.f32.mrf.mxu0  ;;  %v546_v21 = vpop.f32.mrf.mxu1 }
  0xe7   :  { %v464_v22 = vpack.c.bf16 %v538_v20, %v537_v16  ;;  %v484_v23 = vpack.c.bf16 %v546_v21, %v545_v17  ;;  %v343_v38 = vmul.f32 %v538_v20, %v538_v20  ;;  %v351_v6 = vmul.f32 %v546_v21, %v546_v21 }
  0xe8   :  { %v179_v25 = vpop.f32.mrf.mxu0  ;;  %v211_v26 = vpop.f32.mrf.mxu1 }
  0xe9   :  { %496 = vst [vmem:[%s682_s2 + $0x8] sm:$0xff] %v464_v22   ;;  %v459_v27 = vpack.c.bf16 %v179_v25, %v176_v18  ;;  %v319_v28 = vadd.f32 %v179_v25, %v176_v18  ;;  %v341_v29 = vmul.f32 %v179_v25, %v179_v25  ;;  %500 = vst [vmem:[%s682_s2 + $0x28] sm:$0xff] %v484_v23  }
  0xea   :  { %v479_v30 = vpack.c.bf16 %v211_v26, %v208_v19  ;;  %v541_v31 = vpop.f32.mrf.mxu0  ;;  %v549_v32 = vpop.f32.mrf.mxu1  ;;  %v349_v1 = vmul.f32 %v211_v26, %v211_v26 }
  0xeb   :  { %460 = vst [vmem:[%s682_s2] sm:$0xff] %v459_v27   ;;  %v320_v34 = vadd.f32 %v537_v16, %v319_v28  ;;  %v356_v35 = vadd.f32 %v341_v29, %v340_v24  ;;  %v346_v55 = vmul.f32 %v541_v31, %v541_v31  ;;  %v354_v15 = vmul.f32 %v549_v32, %v549_v32 }
  0xec   :  { %499 = vst [vmem:[%s682_s2 + $0x20] sm:$0xff] %v479_v30   ;;  %v192_v36 = vpop.f32.mrf.mxu0  ;;  %v224_v37 = vpop.f32.mrf.mxu1  ;;  %v584_v28 = vmov 1966171168   ;;  %v383_v29 = vlaneseq }
  0xed   :  { %v357_v39 = vadd.f32 %v356_v35, %v342_v33  ;;  %v321_v40 = vadd.f32 %v538_v20, %v320_v34  ;;  %v344_v44 = vmul.f32 %v192_v36, %v192_v36  ;;  %v352_v10 = vmul.f32 %v224_v37, %v224_v37 }
  0xee   :  { %v542_v41 = vpop.f32.mrf.mxu0  ;;  %v550_v42 = vpop.f32.mrf.mxu1  ;;  %vm397_vm0 = vcmp.lt.s32.totalorder %v383_v29, 256 }
  0xef   :  { %v322_v43 = vadd.f32 %v321_v40, %v192_v36  ;;  %v358_v45 = vadd.f32 %v357_v39, %v343_v38  ;;  %v474_v46 = vpack.c.bf16 %v542_v41, %v541_v31  ;;  %v494_v48 = vpack.c.bf16 %v550_v42, %v549_v32 }
  0xf0   :  { %v195_v47 = vpop.f32.mrf.mxu0  ;;  %v227_v49 = vpop.f32.mrf.mxu1  ;;  %v347_v58 = vmul.f32 %v542_v41, %v542_v41  ;;  %v355_v20 = vmul.f32 %v550_v42, %v550_v42 }
  0xf1   :  { %v359_v50 = vadd.f32 %v358_v45, %v344_v44  ;;  %498 = vst [vmem:[%s682_s2 + $0x18] sm:$0xff] %v474_v46   ;;  %v469_v51 = vpack.c.bf16 %v195_v47, %v192_v36  ;;  %v323_v52 = vadd.f32 %v322_v43, %v195_v47  ;;  %v345_v53 = vmul.f32 %v195_v47, %v195_v47 }
  0xf2   :  { %502 = vst [vmem:[%s682_s2 + $0x38] sm:$0xff] %v494_v48   ;;  %v489_v54 = vpack.c.bf16 %v227_v49, %v224_v37  ;;  %v353_v14 = vmul.f32 %v227_v49, %v227_v49  ;;  %v384_v36 = vshrl.u32 %v383_v29, 7 }
  0xf3   :  { %497 = vst [vmem:[%s682_s2 + $0x10] sm:$0xff] %v469_v51   ;;  %v324_v56 = vadd.f32 %v541_v31, %v323_v52  ;;  %v360_v57 = vadd.f32 %v359_v50, %v345_v53 }
  0xf4   :  { %501 = vst [vmem:[%s682_s2 + $0x30] sm:$0xff] %v489_v54  }
  0xf5   :  { %v325_v59 = vadd.f32 %v542_v41, %v324_v56  ;;  %v361_v60 = vadd.f32 %v360_v57, %v346_v55 }
  0xf7   :  { %v362_v62 = vadd.f32 %v361_v60, %v347_v58  ;;  %v326_v63 = vadd.f32 %v325_v59, %v208_v19 }
  0xf9   :  { %v327_v0 = vadd.f32 %v326_v63, %v211_v26  ;;  %v363_v2 = vadd.f32 %v362_v62, %v348_v61 }
  0xfb   :  { %v328_v4 = vadd.f32 %v545_v17, %v327_v0  ;;  %v364_v5 = vadd.f32 %v363_v2, %v349_v1 }
  0xfd   :  { %v365_v7 = vadd.f32 %v364_v5, %v350_v3  ;;  %v329_v8 = vadd.f32 %v546_v21, %v328_v4  ;;  %v381_v21 = vunpack.c.l.s4 %v584_v28 }
  0xff   :  { %v330_v9 = vadd.f32 %v329_v8, %v224_v37  ;;  %v366_v11 = vadd.f32 %v365_v7, %v351_v6  ;;  %v382_v35 = vunpack.c.0.s8 %v381_v21 }
 0x101   :  { %v367_v12 = vadd.f32 %v366_v11, %v352_v10  ;;  %v331_v13 = vadd.f32 %v330_v9, %v227_v49  ;;  %v385_v39 = vsub.s32 %v382_v35, %v384_v36 }
 0x103   :  { %v332_v16 = vadd.f32 %v549_v32, %v331_v13  ;;  %v368_v18 = vadd.f32 %v367_v12, %v353_v14 }
 0x105   :  { %v333_v19 = vadd.f32 %v550_v42, %v332_v16  ;;  %v369_v22 = vadd.f32 %v368_v18, %v354_v15 }
 0x107   :  { %v334_v23 = vrot.slane %v333_v19, 4  ;;  %v370_v24 = vadd.f32 %v369_v22, %v355_v20 }
 0x109   :  { %v335_v25 = vadd.f32 %v334_v23, %v333_v19  ;;  %v371_v17 = vrot.slane %v370_v24, 4 }
 0x10b   :  { %v336_v26 = vrot.slane %v335_v25, 2  ;;  %v372_v27 = vadd.f32 %v371_v17, %v370_v24 }
 0x10d   :  { %v337_v30 = vadd.f32 %v336_v26, %v335_v25  ;;  %v373_v31 = vrot.slane %v372_v27, 2 }
 0x10f   :  { %v338_v33 = vrot.slane %v337_v30, 1  ;;  %v374_v34 = vadd.f32 %v373_v31, %v372_v27 }
 0x111   :  { %v375_v32 = vrot.slane %v374_v34, 1  ;;  %v339_v37 = vadd.f32 %v338_v33, %v337_v30 }
 0x113   :  { %v376_v38 = vadd.f32 %v375_v32, %v374_v34 }
 0x115   :  { %v379_v40 = vcombine.low %v339_v37, %v376_v38 }
 0x117   :  { %v386_v41 = vrot.slane %v379_v40, %v385_v39 }
 0x119   :  { %v393_v42 = vrot.slane %v386_v41, %v385_v39 }
 0x11b   :  { %399 = vst.msk [vmem:[%s683_s3] sm:$0x3] %vm397_vm0, %v393_v42 }

// kernel: encoder_block_forward.9
= control target key start
LH: loop header
LB: loop body
LE: loop exit
PB: predicated region body
PF: predicated region fallthrough
CT: control target
= control target key end

     0   :  { %s682_s1 = inlined_call_operand.vmem [shape: bf16[128,128], index: 1, kind: input, shape index: {}]   ;;  %s683_s0 = inlined_call_operand.vmem [shape: bf16[128,128], index: 0, kind: input, shape index: {}]   ;;  %s684_s2 = inlined_call_operand.vmem [shape: f32[1,128], index: 2, kind: input, shape index: {}]   ;;  %s685_s3 = inlined_call_operand.vmem [shape: f32[1,128], index: 3, kind: input, shape index: {}]   ;;  %s686_s4 = inlined_call_operand.vmem [shape: f32[128,128], index: 4, kind: output, shape index: {0}]   ;;  %s687_s5 = inlined_call_operand.vmem [shape: f32[1,1,256], index: 5, kind: output, shape index: {1}]  }
   0x1   :  { %v502_v0 = vld [vmem:[%s682_s1 + $0x38] sm:$0xff]   ;;  %v503_v1 = vld [vmem:[%s682_s1 + $0x30] sm:$0xff]   ;;  %v504_v2 = vld [vmem:[%s682_s1 + $0x28] sm:$0xff]  }
   0x2   :  { %453 = vmatprep.subr.bf16.mxu0 %v502_v0  ;;  %485 = vmatprep.subr.bf16.mxu1 %v502_v0  ;;  %v505_v3 = vld [vmem:[%s682_s1 + $0x20] sm:$0xff]   ;;  %v430_v8 = vld [vmem:[%s683_s0 + $0x8] sm:$0xff]   ;;  %v431_v9 = vld [vmem:[%s683_s0 + $0x10] sm:$0xff]  }
   0x3   :  { %454 = vmatpush3.bf16.msra.mxu0 %v502_v0  ;;  %493 = vmatpush3.bf16.msra.mxu1 %v502_v0  ;;  %v399_v4 = vld [vmem:[%s683_s0] sm:$0xff]   ;;  %v404_v11 = vunpack.c.l.bf16 %v430_v8  ;;  %v405_v14 = vunpack.c.h.bf16 %v430_v8  ;;  %v506_v16 = vld [vmem:[%s682_s1 + $0x18] sm:$0xff]   ;;  %v408_v17 = vunpack.c.l.bf16 %v431_v9  ;;  %v409_v21 = vunpack.c.h.bf16 %v431_v9  ;;  %v434_v27 = vld [vmem:[%s683_s0 + $0x28] sm:$0xff]  }
   0x4   :  { %455 = vmatprep.subr.bf16.mxu0 %v503_v1  ;;  %486 = vmatprep.subr.bf16.mxu1 %v503_v1  ;;  %v559_v5 = vld [vmem:[%s684_s2] ss:$0 sm:$0xff]  ;;  %v400_v6 = vunpack.c.l.bf16 %v399_v4  ;;  %v401_v7 = vunpack.c.h.bf16 %v399_v4  ;;  %v432_v22 = vld [vmem:[%s683_s0 + $0x18] sm:$0xff]   ;;  %v507_v28 = vld [vmem:[%s682_s1 + $0x10] sm:$0xff]   ;;  %v420_v38 = vunpack.c.l.bf16 %v434_v27  ;;  %v421_v42 = vunpack.c.h.bf16 %v434_v27 }
   0x5   :  { %v570_v10 = vld [vmem:[%s685_s3] ss:$0 sm:$0xff]  ;;  %v61_v20 = vmul.f32 %v404_v11, %v559_v5  ;;  %v62_v26 = vmul.f32 %v405_v14, %v559_v5  ;;  %v63_v29 = vmul.f32 %v408_v17, %v559_v5  ;;  %v435_v30 = vld [vmem:[%s683_s0 + $0x30] sm:$0xff]   ;;  %v412_v32 = vunpack.c.l.bf16 %v432_v22  ;;  %v436_v39 = vld [vmem:[%s683_s0 + $0x38] sm:$0xff]  }
   0x6   :  { %v59_v12 = vmul.f32 %v400_v6, %v559_v5  ;;  %v60_v13 = vmul.f32 %v401_v7, %v559_v5  ;;  %v433_v15 = vld [vmem:[%s683_s0 + $0x20] sm:$0xff]   ;;  %v413_v33 = vunpack.c.h.bf16 %v432_v22  ;;  %v64_v36 = vmul.f32 %v409_v21, %v559_v5  ;;  %v508_v44 = vld [vmem:[%s682_s1 + $0x8] sm:$0xff]  }
   0x7   :  { %456 = vmatpush3.bf16.msra.mxu0 %v503_v1  ;;  %494 = vmatpush3.bf16.msra.mxu1 %v503_v1  ;;  %v416_v23 = vunpack.c.l.bf16 %v433_v15  ;;  %v417_v34 = vunpack.c.h.bf16 %v433_v15  ;;  %v84_v35 = vadd.f32 %v570_v10, %v61_v20  ;;  %v85_v40 = vadd.f32 %v570_v10, %v62_v26  ;;  %v509_v61 = vld [vmem:[%s682_s1] sm:$0xff]  }
   0x8   :  { %457 = vmatprep.subr.bf16.mxu0 %v504_v2  ;;  %487 = vmatprep.subr.bf16.mxu1 %v504_v2  ;;  %v82_v18 = vadd.f32 %v570_v10, %v59_v12  ;;  %v83_v19 = vadd.f32 %v570_v10, %v60_v13  ;;  %v424_v43 = vunpack.c.l.bf16 %v435_v30  ;;  %v86_v45 = vadd.f32 %v570_v10, %v63_v29 }
   0x9   :  { %v67_v37 = vmul.f32 %v416_v23, %v559_v5  ;;  %v68_v41 = vmul.f32 %v417_v34, %v559_v5  ;;  %v69_v47 = vmul.f32 %v420_v38, %v559_v5  ;;  %v425_v48 = vunpack.c.h.bf16 %v435_v30 }
   0xa   :  { %v98_v24 = vmax.f32 %v82_v18, 0.0  ;;  %v99_v25 = vmax.f32 %v83_v19, 0.0  ;;  %v70_v50 = vmul.f32 %v421_v42, %v559_v5  ;;  %v71_v51 = vmul.f32 %v424_v43, %v559_v5 }
   0xb   :  { %458 = vmatpush3.bf16.msra.mxu0 %v504_v2  ;;  %495 = vmatpush3.bf16.msra.mxu1 %v504_v2  ;;  %v90_v46 = vadd.f32 %v570_v10, %v67_v37  ;;  %v91_v49 = vadd.f32 %v570_v10, %v68_v41  ;;  %v428_v52 = vunpack.c.l.bf16 %v436_v39  ;;  %v92_v54 = vadd.f32 %v570_v10, %v69_v47 }
   0xc   :  { %459 = vmatprep.subr.bf16.mxu0 %v505_v3  ;;  %488 = vmatprep.subr.bf16.mxu1 %v505_v3  ;;  %v114_v31 = vpack.c.bf16 %v99_v25, %v98_v24  ;;  %v72_v55 = vmul.f32 %v425_v48, %v559_v5  ;;  %v429_v56 = vunpack.c.h.bf16 %v436_v39  ;;  %v87_v57 = vadd.f32 %v570_v10, %v64_v36 }
   0xd   :  { %v106_v53 = vmax.f32 %v90_v46, 0.0  ;;  %v107_v58 = vmax.f32 %v91_v49, 0.0  ;;  %v93_v59 = vadd.f32 %v570_v10, %v70_v50  ;;  %v94_v60 = vadd.f32 %v570_v10, %v71_v51 }
   0xe   :  { %469 = vmatprep.mubr.bf16.mxu0 %v114_v31  ;;  %v65_v62 = vmul.f32 %v412_v32, %v559_v5  ;;  %v95_v63 = vadd.f32 %v570_v10, %v72_v55  ;;  %v100_v0 = vmax.f32 %v84_v35, 0.0  ;;  %v101_v1 = vmax.f32 %v85_v40, 0.0 }
   0xf   :  { %460 = vmatpush3.bf16.msra.mxu0 %v505_v3  ;;  %496 = vmatpush3.bf16.msra.mxu1 %v505_v3  ;;  %v66_v2 = vmul.f32 %v413_v33, %v559_v5  ;;  %v118_v3 = vpack.c.bf16 %v107_v58, %v106_v53  ;;  %v108_v4 = vmax.f32 %v92_v54, 0.0  ;;  %v109_v6 = vmax.f32 %v93_v59, 0.0 }
  0x10   :  { %461 = vmatprep.subr.bf16.mxu0 %v506_v16  ;;  %489 = vmatprep.subr.bf16.mxu1 %v506_v16  ;;  %v73_v7 = vmul.f32 %v428_v52, %v559_v5  ;;  %v74_v8 = vmul.f32 %v429_v56, %v559_v5  ;;  %v102_v9 = vmax.f32 %v86_v45, 0.0  ;;  %v103_v11 = vmax.f32 %v87_v57, 0.0 }
  0x11   :  { %v110_v12 = vmax.f32 %v94_v60, 0.0  ;;  %v111_v13 = vmax.f32 %v95_v63, 0.0  ;;  %v88_v14 = vadd.f32 %v570_v10, %v65_v62  ;;  %v89_v15 = vadd.f32 %v570_v10, %v66_v2  ;;  %477 = vmatprep.mubr.bf16.mxu1 %v118_v3 }
  0x12   :  { %v119_v17 = vpack.c.bf16 %v109_v6, %v108_v4  ;;  %v96_v18 = vadd.f32 %v570_v10, %v73_v7  ;;  %v97_v19 = vadd.f32 %v570_v10, %v74_v8  ;;  %v116_v5 = vpack.c.bf16 %v103_v11, %v102_v9 }
  0x13   :  { %462 = vmatpush3.bf16.msra.mxu0 %v506_v16  ;;  %497 = vmatpush3.bf16.msra.mxu1 %v506_v16  ;;  %v115_v16 = vpack.c.bf16 %v101_v1, %v100_v0  ;;  %v120_v20 = vpack.c.bf16 %v111_v13, %v110_v12  ;;  %v104_v21 = vmax.f32 %v88_v14, 0.0  ;;  %v105_v22 = vmax.f32 %v89_v15, 0.0 }
  0x14   :  { %463 = vmatprep.subr.bf16.mxu0 %v507_v28  ;;  %490 = vmatprep.subr.bf16.mxu1 %v507_v28  ;;  %v112_v23 = vmax.f32 %v96_v18, 0.0  ;;  %v113_v24 = vmax.f32 %v97_v19, 0.0 }
  0x15   :  { %v117_v25 = vpack.c.bf16 %v105_v22, %v104_v21 }
  0x16   :  { %v121_v26 = vpack.c.bf16 %v113_v24, %v112_v23 }
  0x17   :  { %464 = vmatpush3.bf16.msra.mxu0 %v507_v28  ;;  %498 = vmatpush3.bf16.msra.mxu1 %v507_v28 }
  0x18   :  { %465 = vmatprep.subr.bf16.mxu0 %v508_v44  ;;  %491 = vmatprep.subr.bf16.mxu1 %v508_v44 }
  0x1b   :  { %466 = vmatpush3.bf16.msra.mxu0 %v508_v44  ;;  %499 = vmatpush3.bf16.msra.mxu1 %v508_v44 }
  0x1c   :  { %467 = vmatprep.subr.bf16.mxu0 %v509_v61  ;;  %492 = vmatprep.subr.bf16.mxu1 %v509_v61 }
  0x1f   :  { %468 = vmatpush3.bf16.msra.mxu0 %v509_v61  ;;  %500 = vmatpush3.bf16.msra.mxu1 %v509_v61 }
  0x22   :  { %470 = vmatmul.mubr.bf16.vlgmr.msra.gmra.mxu0 %v115_v16  ;;  %478 = vmatmul.mubr.bf16.vlgmr.msra.gmra.mxu1 %v119_v17 }
  0x23   :  { %473 = vmatprep.mubr.bf16.mxu0 %v116_v5  ;;  %481 = vmatprep.mubr.bf16.mxu1 %v120_v20 }
  0x2a   :  { %474 = vmatmul.mubr.bf16.gmra.mxu0 %v117_v25  ;;  %482 = vmatmul.mubr.bf16.gmra.mxu1 %v121_v26 }
  0xe2   :  { %v471_v27 = vpop.f32.mrf.mxu0  ;;  %v479_v28 = vpop.f32.mrf.mxu1 }
  0xe3   :  { %285 = vst [vmem:[%s686_s4 + $0x10] sm:$0xff] %v471_v27  ;;  %293 = vst [vmem:[%s686_s4 + $0x50] sm:$0xff] %v479_v28  ;;  %v322_v39 = vmul.f32 %v471_v27, %v471_v27  ;;  %v330_v6 = vmul.f32 %v479_v28, %v479_v28 }
  0xe4   :  { %v220_v10 = vpop.f32.mrf.mxu0  ;;  %v252_v29 = vpop.f32.mrf.mxu1 }
  0xe5   :  { %283 = vst [vmem:[%s686_s4] sm:$0xff] %v220_v10  ;;  %291 = vst [vmem:[%s686_s4 + $0x40] sm:$0xff] %v252_v29  ;;  %v320_v34 = vmul.f32 %v220_v10, %v220_v10  ;;  %v328_v63 = vmul.f32 %v252_v29, %v252_v29 }
  0xe6   :  { %v472_v30 = vpop.f32.mrf.mxu0  ;;  %v480_v31 = vpop.f32.mrf.mxu1 }
  0xe7   :  { %286 = vst [vmem:[%s686_s4 + $0x18] sm:$0xff] %v472_v30  ;;  %294 = vst [vmem:[%s686_s4 + $0x58] sm:$0xff] %v480_v31  ;;  %v323_v44 = vmul.f32 %v472_v30, %v472_v30  ;;  %v331_v9 = vmul.f32 %v480_v31, %v480_v31 }
  0xe8   :  { %v223_v32 = vpop.f32.mrf.mxu0  ;;  %v255_v33 = vpop.f32.mrf.mxu1 }
  0xe9   :  { %284 = vst [vmem:[%s686_s4 + $0x8] sm:$0xff] %v223_v32  ;;  %v299_v35 = vadd.f32 %v223_v32, %v220_v10  ;;  %v321_v36 = vmul.f32 %v223_v32, %v223_v32  ;;  %292 = vst [vmem:[%s686_s4 + $0x48] sm:$0xff] %v255_v33  ;;  %v329_v3 = vmul.f32 %v255_v33, %v255_v33 }
  0xea   :  { %v475_v37 = vpop.f32.mrf.mxu0  ;;  %v483_v38 = vpop.f32.mrf.mxu1 }
  0xeb   :  { %v300_v40 = vadd.f32 %v471_v27, %v299_v35  ;;  %v336_v41 = vadd.f32 %v321_v36, %v320_v34  ;;  %289 = vst [vmem:[%s686_s4 + $0x30] sm:$0xff] %v475_v37  ;;  %297 = vst [vmem:[%s686_s4 + $0x70] sm:$0xff] %v483_v38  ;;  %v326_v57 = vmul.f32 %v475_v37, %v475_v37 }
  0xec   :  { %v236_v42 = vpop.f32.mrf.mxu0  ;;  %v268_v43 = vpop.f32.mrf.mxu1  ;;  %v334_v19 = vmul.f32 %v483_v38, %v483_v38 }
  0xed   :  { %v337_v45 = vadd.f32 %v336_v41, %v322_v39  ;;  %287 = vst [vmem:[%s686_s4 + $0x20] sm:$0xff] %v236_v42  ;;  %v301_v46 = vadd.f32 %v472_v30, %v300_v40  ;;  %295 = vst [vmem:[%s686_s4 + $0x60] sm:$0xff] %v268_v43  ;;  %v324_v50 = vmul.f32 %v236_v42, %v236_v42 }
  0xee   :  { %v476_v47 = vpop.f32.mrf.mxu0  ;;  %v484_v48 = vpop.f32.mrf.mxu1  ;;  %v332_v14 = vmul.f32 %v268_v43, %v268_v43 }
  0xef   :  { %v302_v49 = vadd.f32 %v301_v46, %v236_v42  ;;  %v338_v51 = vadd.f32 %v337_v45, %v323_v44  ;;  %290 = vst [vmem:[%s686_s4 + $0x38] sm:$0xff] %v476_v47  ;;  %298 = vst [vmem:[%s686_s4 + $0x78] sm:$0xff] %v484_v48  ;;  %v327_v60 = vmul.f32 %v476_v47, %v476_v47 }
  0xf0   :  { %v239_v52 = vpop.f32.mrf.mxu0  ;;  %v271_v53 = vpop.f32.mrf.mxu1  ;;  %v335_v21 = vmul.f32 %v484_v48, %v484_v48 }
  0xf1   :  { %v339_v54 = vadd.f32 %v338_v51, %v324_v50  ;;  %288 = vst [vmem:[%s686_s4 + $0x28] sm:$0xff] %v239_v52  ;;  %v303_v55 = vadd.f32 %v302_v49, %v239_v52  ;;  %v325_v56 = vmul.f32 %v239_v52, %v239_v52  ;;  %296 = vst [vmem:[%s686_s4 + $0x68] sm:$0xff] %v271_v53 }
  0xf2   :  { %v333_v18 = vmul.f32 %v271_v53, %v271_v53 }
  0xf3   :  { %v304_v58 = vadd.f32 %v475_v37, %v303_v55  ;;  %v340_v59 = vadd.f32 %v339_v54, %v325_v56 }
  0xf5   :  { %v305_v61 = vadd.f32 %v476_v47, %v304_v58  ;;  %v341_v62 = vadd.f32 %v340_v59, %v326_v57 }
  0xf7   :  { %v342_v0 = vadd.f32 %v341_v62, %v327_v60  ;;  %v306_v1 = vadd.f32 %v305_v61, %v252_v29  ;;  %v510_v29 = vmov 1966171168  }
  0xf8   :  { %v361_v30 = vunpack.c.l.s4 %v510_v29 }
  0xf9   :  { %v307_v2 = vadd.f32 %v306_v1, %v255_v33  ;;  %v343_v4 = vadd.f32 %v342_v0, %v328_v63 }
  0xfa   :  { %v362_v36 = vunpack.c.0.s8 %v361_v30 }
  0xfb   :  { %v308_v7 = vadd.f32 %v479_v28, %v307_v2  ;;  %v344_v8 = vadd.f32 %v343_v4, %v329_v3 }
  0xfd   :  { %v345_v11 = vadd.f32 %v344_v8, %v330_v6  ;;  %v309_v12 = vadd.f32 %v480_v31, %v308_v7  ;;  %v363_v31 = vlaneseq }
  0xff   :  { %v310_v13 = vadd.f32 %v309_v12, %v268_v43  ;;  %v346_v15 = vadd.f32 %v345_v11, %v331_v9  ;;  %v364_v37 = vshrl.u32 %v363_v31, 7  ;;  %vm377_vm0 = vcmp.lt.s32.totalorder %v363_v31, 256 }
 0x101   :  { %v347_v16 = vadd.f32 %v346_v15, %v332_v14  ;;  %v311_v17 = vadd.f32 %v310_v13, %v271_v53  ;;  %v365_v41 = vsub.s32 %v362_v36, %v364_v37 }
 0x103   :  { %v312_v5 = vadd.f32 %v483_v38, %v311_v17  ;;  %v348_v20 = vadd.f32 %v347_v16, %v333_v18 }
 0x105   :  { %v313_v22 = vadd.f32 %v484_v48, %v312_v5  ;;  %v349_v23 = vadd.f32 %v348_v20, %v334_v19 }
 0x107   :  { %v314_v24 = vrot.slane %v313_v22, 4  ;;  %v350_v25 = vadd.f32 %v349_v23, %v335_v21 }
 0x109   :  { %v315_v26 = vadd.f32 %v314_v24, %v313_v22  ;;  %v351_v27 = vrot.slane %v350_v25, 4 }
 0x10b   :  { %v316_v28 = vrot.slane %v315_v26, 2  ;;  %v352_v10 = vadd.f32 %v351_v27, %v350_v25 }
 0x10d   :  { %v317_v32 = vadd.f32 %v316_v28, %v315_v26  ;;  %v353_v33 = vrot.slane %v352_v10, 2 }
 0x10f   :  { %v318_v34 = vrot.slane %v317_v32, 1  ;;  %v354_v35 = vadd.f32 %v353_v33, %v352_v10 }
 0x111   :  { %v355_v38 = vrot.slane %v354_v35, 1  ;;  %v319_v39 = vadd.f32 %v318_v34, %v317_v32 }
 0x113   :  { %v356_v40 = vadd.f32 %v355_v38, %v354_v35 }
 0x115   :  { %v359_v42 = vcombine.low %v319_v39, %v356_v40 }
 0x117   :  { %v366_v43 = vrot.slane %v359_v42, %v365_v41 }
 0x119   :  { %v373_v44 = vrot.slane %v366_v43, %v365_v41 }
 0x11b   :  { %379 = vst.msk [vmem:[%s687_s5] sm:$0x3] %vm377_vm0, %v373_v44 }

// kernel: encoder_block_forward.10
= control target key start
LH: loop header
LB: loop body
LE: loop exit
PB: predicated region body
PF: predicated region fallthrough
CT: control target
= control target key end

     0   :  { %s466_s0 = inlined_call_operand.vmem [shape: f32[128,128], index: 0, kind: input, shape index: {}]   ;;  %s467_s1 = inlined_call_operand.vmem [shape: f32[1,128], index: 1, kind: input, shape index: {}]   ;;  %s468_s2 = inlined_call_operand.vmem [shape: f32[1,128], index: 2, kind: input, shape index: {}]   ;;  %s469_s3 = inlined_call_operand.vmem [shape: f32[128,128], index: 3, kind: input, shape index: {}]   ;;  %s470_s4 = inlined_call_operand.vmem [shape: f32[1,128], index: 4, kind: input, shape index: {}]   ;;  %s471_s5 = inlined_call_operand.vmem [shape: f32[1,128], index: 5, kind: input, shape index: {}]   ;;  %s472_s6 = inlined_call_operand.vmem [shape: f32[128,128], index: 6, kind: output, shape index: {}]  }
   0x1   :  { %v23_v0 = vld [vmem:[%s466_s0] sm:$0xff]  ;;  %v24_v8 = vld [vmem:[%s466_s0 + $0x8] sm:$0xff]  ;;  %v25_v10 = vld [vmem:[%s466_s0 + $0x10] sm:$0xff] }
   0x2   :  { %v244_v1 = vld [vmem:[%s467_s1] ss:$0 sm:$0xff]  ;;  %v86_v9 = vld [vmem:[%s469_s3 + $0x8] sm:$0xff]  ;;  %v87_v15 = vld [vmem:[%s469_s3 + $0x10] sm:$0xff] }
   0x3   :  { %v249_v2 = vld [vmem:[%s468_s2] ss:$0 sm:$0xff]  ;;  %v46_v3 = vmul.f32 %v244_v1, %v23_v0  ;;  %v47_v12 = vmul.f32 %v244_v1, %v24_v8  ;;  %v48_v14 = vmul.f32 %v244_v1, %v25_v10  ;;  %v26_v16 = vld [vmem:[%s466_s0 + $0x18] sm:$0xff]  ;;  %v28_v24 = vld [vmem:[%s466_s0 + $0x28] sm:$0xff] }
   0x4   :  { %v85_v4 = vld [vmem:[%s469_s3] sm:$0xff]  ;;  %v88_v17 = vld [vmem:[%s469_s3 + $0x18] sm:$0xff]  ;;  %v49_v20 = vmul.f32 %v244_v1, %v26_v16  ;;  %v90_v29 = vld [vmem:[%s469_s3 + $0x28] sm:$0xff]  ;;  %v51_v38 = vmul.f32 %v244_v1, %v28_v24 }
   0x5   :  { %v258_v5 = vld [vmem:[%s470_s4] ss:$0 sm:$0xff]  ;;  %v69_v11 = vadd.f32 %v249_v2, %v46_v3  ;;  %v70_v25 = vadd.f32 %v249_v2, %v47_v12  ;;  %v71_v27 = vadd.f32 %v249_v2, %v48_v14  ;;  %v29_v34 = vld [vmem:[%s466_s0 + $0x30] sm:$0xff]  ;;  %v30_v44 = vld [vmem:[%s466_s0 + $0x38] sm:$0xff] }
   0x6   :  { %v263_v6 = vld [vmem:[%s471_s5] ss:$0 sm:$0xff]  ;;  %v108_v7 = vmul.f32 %v258_v5, %v85_v4  ;;  %v109_v13 = vmul.f32 %v258_v5, %v86_v9  ;;  %v110_v19 = vmul.f32 %v258_v5, %v87_v15  ;;  %v111_v21 = vmul.f32 %v258_v5, %v88_v17  ;;  %v91_v39 = vld [vmem:[%s469_s3 + $0x30] sm:$0xff]  ;;  %v92_v45 = vld [vmem:[%s469_s3 + $0x38] sm:$0xff] }
   0x7   :  { %v27_v22 = vld [vmem:[%s466_s0 + $0x20] sm:$0xff]  ;;  %v72_v32 = vadd.f32 %v249_v2, %v49_v20  ;;  %v113_v43 = vmul.f32 %v258_v5, %v90_v29  ;;  %v74_v48 = vadd.f32 %v249_v2, %v51_v38  ;;  %v52_v49 = vmul.f32 %v244_v1, %v29_v34  ;;  %v32_v56 = vld [vmem:[%s466_s0 + $0x48] sm:$0xff]  ;;  %v33_v4 = vld [vmem:[%s466_s0 + $0x50] sm:$0xff] }
   0x8   :  { %v131_v18 = vadd.f32 %v263_v6, %v108_v7  ;;  %v89_v23 = vld [vmem:[%s469_s3 + $0x20] sm:$0xff]  ;;  %v132_v26 = vadd.f32 %v263_v6, %v109_v13  ;;  %v50_v28 = vmul.f32 %v244_v1, %v27_v22  ;;  %v133_v31 = vadd.f32 %v263_v6, %v110_v19  ;;  %v94_v3 = vld [vmem:[%s469_s3 + $0x48] sm:$0xff]  ;;  %v34_v12 = vld [vmem:[%s466_s0 + $0x58] sm:$0xff] }
   0x9   :  { %v134_v33 = vadd.f32 %v263_v6, %v111_v21  ;;  %v112_v37 = vmul.f32 %v258_v5, %v89_v23  ;;  %v31_v50 = vld [vmem:[%s466_s0 + $0x40] sm:$0xff]  ;;  %v136_v54 = vadd.f32 %v263_v6, %v113_v43  ;;  %v114_v55 = vmul.f32 %v258_v5, %v91_v39  ;;  %v96_v17 = vld [vmem:[%s469_s3 + $0x58] sm:$0xff]  ;;  %v37_v34 = vld [vmem:[%s466_s0 + $0x70] sm:$0xff] }
   0xa   :  { %v147_v30 = vadd.f32 %v131_v18, %v69_v11  ;;  %v148_v35 = vadd.f32 %v132_v26, %v70_v25  ;;  %v73_v36 = vadd.f32 %v249_v2, %v50_v28  ;;  %v149_v41 = vadd.f32 %v133_v31, %v71_v27  ;;  %v93_v51 = vld [vmem:[%s469_s3 + $0x40] sm:$0xff]  ;;  %v95_v11 = vld [vmem:[%s469_s3 + $0x50] sm:$0xff]  ;;  %v36_v28 = vld [vmem:[%s466_s0 + $0x68] sm:$0xff] }
   0xb   :  { %v150_v42 = vadd.f32 %v134_v33, %v72_v32  ;;  %v135_v47 = vadd.f32 %v263_v6, %v112_v37  ;;  %v75_v58 = vadd.f32 %v249_v2, %v52_v49  ;;  %v53_v59 = vmul.f32 %v244_v1, %v30_v44  ;;  %v35_v22 = vld [vmem:[%s466_s0 + $0x60] sm:$0xff]  ;;  %v98_v33 = vld [vmem:[%s469_s3 + $0x68] sm:$0xff]  ;;  %v99_v43 = vld [vmem:[%s469_s3 + $0x70] sm:$0xff] }
   0xc   :  { %v163_v40 = vmax.f32 %v147_v30, 0.0  ;;  %v164_v46 = vmax.f32 %v148_v35, 0.0  ;;  %v165_v52 = vmax.f32 %v149_v41, 0.0  ;;  %v115_v60 = vmul.f32 %v258_v5, %v92_v45  ;;  %v97_v27 = vld [vmem:[%s469_s3 + $0x60] sm:$0xff]  ;;  %v100_v49 = vld [vmem:[%s469_s3 + $0x78] sm:$0xff] }
   0xd   :  { %v166_v53 = vmax.f32 %v150_v42, 0.0  ;;  %v151_v57 = vadd.f32 %v135_v47, %v73_v36  ;;  %v152_v61 = vadd.f32 %v136_v54, %v74_v48  ;;  %v137_v62 = vadd.f32 %v263_v6, %v114_v55  ;;  %v38_v48 = vld [vmem:[%s466_s0 + $0x78] sm:$0xff] }
   0xe   :  { %179 = vst [vmem:[%s472_s6] sm:$0xff] %v163_v40  ;;  %180 = vst [vmem:[%s472_s6 + $0x8] sm:$0xff] %v164_v46  ;;  %v54_v63 = vmul.f32 %v244_v1, %v31_v50  ;;  %v116_v0 = vmul.f32 %v258_v5, %v93_v51  ;;  %v76_v8 = vadd.f32 %v249_v2, %v53_v59 }
   0xf   :  { %181 = vst [vmem:[%s472_s6 + $0x10] sm:$0xff] %v165_v52  ;;  %182 = vst [vmem:[%s472_s6 + $0x18] sm:$0xff] %v166_v53  ;;  %v167_v7 = vmax.f32 %v151_v57, 0.0  ;;  %v138_v9 = vadd.f32 %v263_v6, %v115_v60  ;;  %v55_v10 = vmul.f32 %v244_v1, %v32_v56  ;;  %v168_v13 = vmax.f32 %v152_v61, 0.0 }
  0x10   :  { %v153_v14 = vadd.f32 %v137_v62, %v75_v58  ;;  %v77_v15 = vadd.f32 %v249_v2, %v54_v63  ;;  %v139_v16 = vadd.f32 %v263_v6, %v116_v0  ;;  %v117_v20 = vmul.f32 %v258_v5, %v94_v3 }
  0x11   :  { %183 = vst [vmem:[%s472_s6 + $0x20] sm:$0xff] %v167_v7  ;;  %v154_v18 = vadd.f32 %v138_v9, %v76_v8  ;;  %v78_v19 = vadd.f32 %v249_v2, %v55_v10  ;;  %v56_v21 = vmul.f32 %v244_v1, %v33_v4  ;;  %184 = vst [vmem:[%s472_s6 + $0x28] sm:$0xff] %v168_v13 }
  0x12   :  { %v169_v23 = vmax.f32 %v153_v14, 0.0  ;;  %v155_v24 = vadd.f32 %v139_v16, %v77_v15  ;;  %v118_v25 = vmul.f32 %v258_v5, %v95_v11  ;;  %v57_v26 = vmul.f32 %v244_v1, %v34_v12 }
  0x13   :  { %v170_v29 = vmax.f32 %v154_v18, 0.0  ;;  %v140_v30 = vadd.f32 %v263_v6, %v117_v20  ;;  %v79_v31 = vadd.f32 %v249_v2, %v56_v21  ;;  %v119_v32 = vmul.f32 %v258_v5, %v96_v17 }
  0x14   :  { %185 = vst [vmem:[%s472_s6 + $0x30] sm:$0xff] %v169_v23  ;;  %v171_v35 = vmax.f32 %v155_v24, 0.0  ;;  %v141_v36 = vadd.f32 %v263_v6, %v118_v25  ;;  %v80_v37 = vadd.f32 %v249_v2, %v57_v26  ;;  %v58_v38 = vmul.f32 %v244_v1, %v35_v22 }
  0x15   :  { %186 = vst [vmem:[%s472_s6 + $0x38] sm:$0xff] %v170_v29  ;;  %v156_v39 = vadd.f32 %v140_v30, %v78_v19  ;;  %v142_v40 = vadd.f32 %v263_v6, %v119_v32  ;;  %v120_v41 = vmul.f32 %v258_v5, %v97_v27  ;;  %v59_v42 = vmul.f32 %v244_v1, %v36_v28 }
  0x16   :  { %187 = vst [vmem:[%s472_s6 + $0x40] sm:$0xff] %v171_v35  ;;  %v157_v44 = vadd.f32 %v141_v36, %v79_v31  ;;  %v81_v45 = vadd.f32 %v249_v2, %v58_v38  ;;  %v121_v46 = vmul.f32 %v258_v5, %v98_v33  ;;  %v60_v47 = vmul.f32 %v244_v1, %v37_v34 }
  0x17   :  { %v172_v50 = vmax.f32 %v156_v39, 0.0  ;;  %v158_v51 = vadd.f32 %v142_v40, %v80_v37  ;;  %v143_v52 = vadd.f32 %v263_v6, %v120_v41  ;;  %v82_v53 = vadd.f32 %v249_v2, %v59_v42 }
  0x18   :  { %v173_v54 = vmax.f32 %v157_v44, 0.0  ;;  %v144_v55 = vadd.f32 %v263_v6, %v121_v46  ;;  %v83_v56 = vadd.f32 %v249_v2, %v60_v47  ;;  %v122_v57 = vmul.f32 %v258_v5, %v99_v43 }
  0x19   :  { %188 = vst [vmem:[%s472_s6 + $0x48] sm:$0xff] %v172_v50  ;;  %v174_v58 = vmax.f32 %v158_v51, 0.0  ;;  %v159_v59 = vadd.f32 %v143_v52, %v81_v45  ;;  %v61_v60 = vmul.f32 %v244_v1, %v38_v48  ;;  %v123_v61 = vmul.f32 %v258_v5, %v100_v49 }
  0x1a   :  { %189 = vst [vmem:[%s472_s6 + $0x50] sm:$0xff] %v173_v54  ;;  %v160_v62 = vadd.f32 %v144_v55, %v82_v53  ;;  %v145_v63 = vadd.f32 %v263_v6, %v122_v57 }
  0x1b   :  { %190 = vst [vmem:[%s472_s6 + $0x58] sm:$0xff] %v174_v58  ;;  %v175_v0 = vmax.f32 %v159_v59, 0.0  ;;  %v84_v3 = vadd.f32 %v249_v2, %v61_v60  ;;  %v146_v4 = vadd.f32 %v263_v6, %v123_v61 }
  0x1c   :  { %v176_v7 = vmax.f32 %v160_v62, 0.0  ;;  %v161_v1 = vadd.f32 %v145_v63, %v83_v56 }
  0x1d   :  { %191 = vst [vmem:[%s472_s6 + $0x60] sm:$0xff] %v175_v0  ;;  %v162_v5 = vadd.f32 %v146_v4, %v84_v3 }
  0x1e   :  { %192 = vst [vmem:[%s472_s6 + $0x68] sm:$0xff] %v176_v7  ;;  %v177_v8 = vmax.f32 %v161_v1, 0.0 }
  0x1f   :  { %v178_v9 = vmax.f32 %v162_v5, 0.0 }
  0x20   :  { %193 = vst [vmem:[%s472_s6 + $0x70] sm:$0xff] %v177_v8 }
  0x21   :  { %194 = vst [vmem:[%s472_s6 + $0x78] sm:$0xff] %v178_v9 }

// kernel: encoder_block_forward.8
= control target key start
LH: loop header
LB: loop body
LE: loop exit
PB: predicated region body
PF: predicated region fallthrough
CT: control target
= control target key end

     0   :  { %s561_s1 = inlined_call_operand.vmem [shape: bf16[128,128], index: 1, kind: input, shape index: {}]   ;;  %s562_s0 = inlined_call_operand.vmem [shape: bf16[128,128], index: 0, kind: input, shape index: {}]   ;;  %s563_s2 = inlined_call_operand.vmem [shape: f32[128,128], index: 2, kind: output, shape index: {0}]   ;;  %s564_s3 = inlined_call_operand.vmem [shape: f32[1,1,256], index: 3, kind: output, shape index: {1}]  }
   0x1   :  { %v425_v0 = vld [vmem:[%s561_s1 + $0x38] sm:$0xff]   ;;  %v426_v1 = vld [vmem:[%s561_s1 + $0x30] sm:$0xff]   ;;  %v427_v2 = vld [vmem:[%s561_s1 + $0x28] sm:$0xff]  }
   0x2   :  { %376 = vmatprep.subr.bf16.mxu0 %v425_v0  ;;  %408 = vmatprep.subr.bf16.mxu1 %v425_v0  ;;  %v428_v3 = vld [vmem:[%s561_s1 + $0x20] sm:$0xff]   ;;  %v429_v5 = vld [vmem:[%s561_s1 + $0x18] sm:$0xff]   ;;  %v430_v7 = vld [vmem:[%s561_s1 + $0x10] sm:$0xff]  }
   0x3   :  { %377 = vmatpush3.bf16.msra.mxu0 %v425_v0  ;;  %416 = vmatpush3.bf16.msra.mxu1 %v425_v0  ;;  %v433_v4 = vld [vmem:[%s562_s0] sm:$0xff]   ;;  %v431_v8 = vld [vmem:[%s561_s1 + $0x8] sm:$0xff]   ;;  %v435_v12 = vld [vmem:[%s562_s0 + $0x10] sm:$0xff]  }
   0x4   :  { %378 = vmatprep.subr.bf16.mxu0 %v426_v1  ;;  %409 = vmatprep.subr.bf16.mxu1 %v426_v1  ;;  %v437_v6 = vld [vmem:[%s562_s0 + $0x20] sm:$0xff]   ;;  %v434_v10 = vld [vmem:[%s562_s0 + $0x8] sm:$0xff]   ;;  %v439_v13 = vld [vmem:[%s562_s0 + $0x30] sm:$0xff]  }
   0x5   :  { %392 = vmatprep.mubr.bf16.mxu0 %v433_v4  ;;  %400 = vmatprep.mubr.bf16.mxu1 %v437_v6  ;;  %v432_v9 = vld [vmem:[%s561_s1] sm:$0xff]   ;;  %v438_v11 = vld [vmem:[%s562_s0 + $0x28] sm:$0xff]   ;;  %v436_v14 = vld [vmem:[%s562_s0 + $0x18] sm:$0xff]  }
   0x6   :  { %v440_v15 = vld [vmem:[%s562_s0 + $0x38] sm:$0xff]  }
   0x7   :  { %379 = vmatpush3.bf16.msra.mxu0 %v426_v1  ;;  %417 = vmatpush3.bf16.msra.mxu1 %v426_v1 }
   0x8   :  { %380 = vmatprep.subr.bf16.mxu0 %v427_v2  ;;  %410 = vmatprep.subr.bf16.mxu1 %v427_v2 }
   0xb   :  { %381 = vmatpush3.bf16.msra.mxu0 %v427_v2  ;;  %418 = vmatpush3.bf16.msra.mxu1 %v427_v2 }
   0xc   :  { %382 = vmatprep.subr.bf16.mxu0 %v428_v3  ;;  %411 = vmatprep.subr.bf16.mxu1 %v428_v3 }
   0xf   :  { %383 = vmatpush3.bf16.msra.mxu0 %v428_v3  ;;  %419 = vmatpush3.bf16.msra.mxu1 %v428_v3 }
  0x10   :  { %384 = vmatprep.subr.bf16.mxu0 %v429_v5  ;;  %412 = vmatprep.subr.bf16.mxu1 %v429_v5 }
  0x13   :  { %385 = vmatpush3.bf16.msra.mxu0 %v429_v5  ;;  %420 = vmatpush3.bf16.msra.mxu1 %v429_v5 }
  0x14   :  { %386 = vmatprep.subr.bf16.mxu0 %v430_v7  ;;  %413 = vmatprep.subr.bf16.mxu1 %v430_v7 }
  0x17   :  { %387 = vmatpush3.bf16.msra.mxu0 %v430_v7  ;;  %421 = vmatpush3.bf16.msra.mxu1 %v430_v7 }
  0x18   :  { %388 = vmatprep.subr.bf16.mxu0 %v431_v8  ;;  %414 = vmatprep.subr.bf16.mxu1 %v431_v8 }
  0x1b   :  { %389 = vmatpush3.bf16.msra.mxu0 %v431_v8  ;;  %422 = vmatpush3.bf16.msra.mxu1 %v431_v8 }
  0x1c   :  { %390 = vmatprep.subr.bf16.mxu0 %v432_v9  ;;  %415 = vmatprep.subr.bf16.mxu1 %v432_v9 }
  0x1f   :  { %391 = vmatpush3.bf16.msra.mxu0 %v432_v9  ;;  %423 = vmatpush3.bf16.msra.mxu1 %v432_v9 }
  0x22   :  { %393 = vmatmul.mubr.bf16.vlgmr.msra.gmra.mxu0 %v434_v10  ;;  %401 = vmatmul.mubr.bf16.vlgmr.msra.gmra.mxu1 %v438_v11 }
  0x23   :  { %396 = vmatprep.mubr.bf16.mxu0 %v435_v12  ;;  %404 = vmatprep.mubr.bf16.mxu1 %v439_v13 }
  0x2a   :  { %397 = vmatmul.mubr.bf16.gmra.mxu0 %v436_v14  ;;  %405 = vmatmul.mubr.bf16.gmra.mxu1 %v440_v15 }
  0xe2   :  { %v394_v16 = vpop.f32.mrf.mxu0  ;;  %v402_v17 = vpop.f32.mrf.mxu1 }
  0xe3   :  { %241 = vst [vmem:[%s563_s2 + $0x10] sm:$0xff] %v394_v16  ;;  %249 = vst [vmem:[%s563_s2 + $0x50] sm:$0xff] %v402_v17  ;;  %v278_v29 = vmul.f32 %v394_v16, %v394_v16  ;;  %v286_v59 = vmul.f32 %v402_v17, %v402_v17 }
  0xe4   :  { %v176_v18 = vpop.f32.mrf.mxu0  ;;  %v208_v19 = vpop.f32.mrf.mxu1 }
  0xe5   :  { %239 = vst [vmem:[%s563_s2] sm:$0xff] %v176_v18  ;;  %247 = vst [vmem:[%s563_s2 + $0x40] sm:$0xff] %v208_v19  ;;  %v276_v24 = vmul.f32 %v176_v18, %v176_v18  ;;  %v284_v53 = vmul.f32 %v208_v19, %v208_v19 }
  0xe6   :  { %v395_v20 = vpop.f32.mrf.mxu0  ;;  %v403_v21 = vpop.f32.mrf.mxu1 }
  0xe7   :  { %242 = vst [vmem:[%s563_s2 + $0x18] sm:$0xff] %v395_v20  ;;  %250 = vst [vmem:[%s563_s2 + $0x58] sm:$0xff] %v403_v21  ;;  %v279_v34 = vmul.f32 %v395_v20, %v395_v20  ;;  %v287_v62 = vmul.f32 %v403_v21, %v403_v21 }
  0xe8   :  { %v179_v22 = vpop.f32.mrf.mxu0  ;;  %v211_v23 = vpop.f32.mrf.mxu1 }
  0xe9   :  { %240 = vst [vmem:[%s563_s2 + $0x8] sm:$0xff] %v179_v22  ;;  %v255_v25 = vadd.f32 %v179_v22, %v176_v18  ;;  %v277_v26 = vmul.f32 %v179_v22, %v179_v22  ;;  %248 = vst [vmem:[%s563_s2 + $0x48] sm:$0xff] %v211_v23  ;;  %v285_v57 = vmul.f32 %v211_v23, %v211_v23 }
  0xea   :  { %v398_v27 = vpop.f32.mrf.mxu0  ;;  %v406_v28 = vpop.f32.mrf.mxu1 }
  0xeb   :  { %v256_v30 = vadd.f32 %v394_v16, %v255_v25  ;;  %v292_v31 = vadd.f32 %v277_v26, %v276_v24  ;;  %245 = vst [vmem:[%s563_s2 + $0x30] sm:$0xff] %v398_v27  ;;  %253 = vst [vmem:[%s563_s2 + $0x70] sm:$0xff] %v406_v28  ;;  %v282_v47 = vmul.f32 %v398_v27, %v398_v27 }
  0xec   :  { %v192_v32 = vpop.f32.mrf.mxu0  ;;  %v224_v33 = vpop.f32.mrf.mxu1  ;;  %v290_v7 = vmul.f32 %v406_v28, %v406_v28 }
  0xed   :  { %v293_v35 = vadd.f32 %v292_v31, %v278_v29  ;;  %243 = vst [vmem:[%s563_s2 + $0x20] sm:$0xff] %v192_v32  ;;  %v257_v36 = vadd.f32 %v395_v20, %v256_v30  ;;  %251 = vst [vmem:[%s563_s2 + $0x60] sm:$0xff] %v224_v33  ;;  %v280_v40 = vmul.f32 %v192_v32, %v192_v32 }
  0xee   :  { %v399_v37 = vpop.f32.mrf.mxu0  ;;  %v407_v38 = vpop.f32.mrf.mxu1  ;;  %v288_v2 = vmul.f32 %v224_v33, %v224_v33 }
  0xef   :  { %v258_v39 = vadd.f32 %v257_v36, %v192_v32  ;;  %v294_v41 = vadd.f32 %v293_v35, %v279_v34  ;;  %246 = vst [vmem:[%s563_s2 + $0x38] sm:$0xff] %v399_v37  ;;  %254 = vst [vmem:[%s563_s2 + $0x78] sm:$0xff] %v407_v38  ;;  %v283_v50 = vmul.f32 %v399_v37, %v399_v37 }
  0xf0   :  { %v195_v42 = vpop.f32.mrf.mxu0  ;;  %v227_v43 = vpop.f32.mrf.mxu1  ;;  %v291_v10 = vmul.f32 %v407_v38, %v407_v38 }
  0xf1   :  { %v295_v44 = vadd.f32 %v294_v41, %v280_v40  ;;  %244 = vst [vmem:[%s563_s2 + $0x28] sm:$0xff] %v195_v42  ;;  %v259_v45 = vadd.f32 %v258_v39, %v195_v42  ;;  %v281_v46 = vmul.f32 %v195_v42, %v195_v42  ;;  %252 = vst [vmem:[%s563_s2 + $0x68] sm:$0xff] %v227_v43 }
  0xf2   :  { %v289_v6 = vmul.f32 %v227_v43, %v227_v43 }
  0xf3   :  { %v260_v48 = vadd.f32 %v398_v27, %v259_v45  ;;  %v296_v49 = vadd.f32 %v295_v44, %v281_v46 }
  0xf5   :  { %v261_v51 = vadd.f32 %v399_v37, %v260_v48  ;;  %v297_v52 = vadd.f32 %v296_v49, %v282_v47 }
  0xf7   :  { %v298_v54 = vadd.f32 %v297_v52, %v283_v50  ;;  %v262_v55 = vadd.f32 %v261_v51, %v208_v19  ;;  %v441_v19 = vmov 1966171168  }
  0xf8   :  { %v317_v20 = vunpack.c.l.s4 %v441_v19 }
  0xf9   :  { %v263_v56 = vadd.f32 %v262_v55, %v211_v23  ;;  %v299_v58 = vadd.f32 %v298_v54, %v284_v53 }
  0xfa   :  { %v318_v26 = vunpack.c.0.s8 %v317_v20 }
  0xfb   :  { %v264_v60 = vadd.f32 %v402_v17, %v263_v56  ;;  %v300_v61 = vadd.f32 %v299_v58, %v285_v57 }
  0xfd   :  { %v301_v63 = vadd.f32 %v300_v61, %v286_v59  ;;  %v265_v0 = vadd.f32 %v403_v21, %v264_v60  ;;  %v319_v21 = vlaneseq }
  0xff   :  { %v266_v1 = vadd.f32 %v265_v0, %v224_v33  ;;  %v302_v3 = vadd.f32 %v301_v63, %v287_v62  ;;  %v320_v27 = vshrl.u32 %v319_v21, 7  ;;  %vm333_vm0 = vcmp.lt.s32.totalorder %v319_v21, 256 }
 0x101   :  { %v303_v4 = vadd.f32 %v302_v3, %v288_v2  ;;  %v267_v5 = vadd.f32 %v266_v1, %v227_v43  ;;  %v321_v31 = vsub.s32 %v318_v26, %v320_v27 }
 0x103   :  { %v268_v8 = vadd.f32 %v406_v28, %v267_v5  ;;  %v304_v9 = vadd.f32 %v303_v4, %v289_v6 }
 0x105   :  { %v269_v11 = vadd.f32 %v407_v38, %v268_v8  ;;  %v305_v12 = vadd.f32 %v304_v9, %v290_v7 }
 0x107   :  { %v270_v13 = vrot.slane %v269_v11, 4  ;;  %v306_v14 = vadd.f32 %v305_v12, %v291_v10 }
 0x109   :  { %v271_v15 = vadd.f32 %v270_v13, %v269_v11  ;;  %v307_v16 = vrot.slane %v306_v14, 4 }
 0x10b   :  { %v272_v17 = vrot.slane %v271_v15, 2  ;;  %v308_v18 = vadd.f32 %v307_v16, %v306_v14 }
 0x10d   :  { %v273_v22 = vadd.f32 %v272_v17, %v271_v15  ;;  %v309_v23 = vrot.slane %v308_v18, 2 }
 0x10f   :  { %v274_v24 = vrot.slane %v273_v22, 1  ;;  %v310_v25 = vadd.f32 %v309_v23, %v308_v18 }
 0x111   :  { %v311_v28 = vrot.slane %v310_v25, 1  ;;  %v275_v29 = vadd.f32 %v274_v24, %v273_v22 }
 0x113   :  { %v312_v30 = vadd.f32 %v311_v28, %v310_v25 }
 0x115   :  { %v315_v32 = vcombine.low %v275_v29, %v312_v30 }
 0x117   :  { %v322_v33 = vrot.slane %v315_v32, %v321_v31 }
 0x119   :  { %v329_v34 = vrot.slane %v322_v33, %v321_v31 }
 0x11b   :  { %335 = vst.msk [vmem:[%s564_s3] sm:$0x3] %vm333_vm0, %v329_v34 }

</bundles_post_ra>
